<compile_context>
chip_gen: v7x
topology: tpu7x:2x2x1
jax: 0.10.0
libtpu: 0.0.40
codegen_flags: <defaults>
</compile_context>

<pallas_src>
import functools

import jax
import jax.numpy as jnp
from jax.experimental import pallas as pl
from jax.experimental.pallas import tpu as pltpu

EPS = 1e-5  # nn.BatchNorm2d default


# ---------------------------------------------------------------------------
# Fused kernel: (conv3x3 + BN + PReLU) x 2 for one (batch, row-tile) grid step.
# ---------------------------------------------------------------------------
def _vgg_block_kernel(x_ref, w1_ref, s1_ref, b1_ref, w2_ref, s2_ref, b2_ref,
                      alpha_ref, o_ref, xpad_ref, midpad_ref):
    # x_ref:      (1, H, W, Cin)     full input plane (resident across h-tiles)
    # w1_ref:     (9*Cin, Cmid)      conv1 weights, im2col-packed (tap-major)
    # s1_ref:     (1, Cmid)          folded BN1 scale
    # b1_ref:     (1, Cmid)          folded BN1 shift (includes conv1 bias)
    # w2_ref:     (9*Cmid, Cout)     conv2 weights, im2col-packed
    # s2_ref:     (1, Cout)          folded BN2 scale
    # b2_ref:     (1, Cout)          folded BN2 shift (includes conv2 bias)
    # alpha_ref:  (1,) in SMEM       shared PReLU slope
    # o_ref:      (1, TH, W, Cout)   output row tile [t*TH, t*TH + TH)
    # xpad_ref:   (H+4, W+2, Cin)    zero-padded input plane   (VMEM scratch)
    # midpad_ref: (TH+2, W+2, Cmid)  zero-padded conv1 out tile (VMEM scratch)
    t = pl.program_id(1)
    n_t = pl.num_programs(1)
    H = x_ref.shape[1]
    TH = o_ref.shape[1]
    W = o_ref.shape[2]
    cin = x_ref.shape[3]
    cmid = midpad_ref.shape[2]
    cout = o_ref.shape[3]
    alpha = alpha_ref[0]

    # Build the zero-padded input plane once per batch element.  The h-tile
    # grid axis is "arbitrary" (sequential), so this scratch stays valid for
    # the remaining tiles of the same batch element.
    @pl.when(t == 0)
    def _():
        xpad_ref[...] = jnp.zeros_like(xpad_ref)
        xpad_ref[2:H + 2, 1:W + 1, :] = x_ref[0]

    r0 = pl.multiple_of(t * TH, TH)  # first output row of this tile

    # ---- Stage 1: conv1 + BN1 + PReLU on rows [r0-1, r0+TH+1) ---------------
    # (one extra row above/below = the halo conv2 needs).  im2col gives a
    # single ((TH+2)*W, 9*Cin) x (9*Cin, Cmid) MXU contraction.
    taps = []
    for dy in range(3):
        for dx in range(3):
            taps.append(xpad_ref[pl.ds(r0 + dy, TH + 2), pl.ds(dx, W), :])
    col1 = jnp.concatenate(taps, axis=-1).reshape((TH + 2) * W, 9 * cin)
    mid = jnp.dot(col1, w1_ref[...], preferred_element_type=jnp.float32)
    mid = mid * s1_ref[0] + b1_ref[0]
    mid = jnp.where(mid > 0, mid, alpha * mid)          # PReLU (shared alpha)

    # ---- Re-pad the intermediate for conv2 ----------------------------------
    # The column halo (and the row halo at the image border) is conv2's own
    # zero padding, not conv1 evaluated out of range, so it must be zero.
    midpad_ref[...] = jnp.zeros_like(midpad_ref)
    midpad_ref[:, 1:W + 1, :] = mid.reshape(TH + 2, W, cmid)

    @pl.when(t == 0)
    def _():
        midpad_ref[0, :, :] = jnp.zeros((W + 2, cmid), jnp.float32)

    @pl.when(t == n_t - 1)
    def _():
        midpad_ref[TH + 1, :, :] = jnp.zeros((W + 2, cmid), jnp.float32)

    # ---- Stage 2: conv2 + BN2 + PReLU on rows [r0, r0+TH) -------------------
    taps = []
    for dy in range(3):
        for dx in range(3):
            taps.append(midpad_ref[pl.ds(dy, TH), pl.ds(dx, W), :])
    col2 = jnp.concatenate(taps, axis=-1).reshape(TH * W, 9 * cmid)
    y = jnp.dot(col2, w2_ref[...], preferred_element_type=jnp.float32)
    y = y * s2_ref[0] + b2_ref[0]
    y = jnp.where(y > 0, y, alpha * y)

    o_ref[0] = y.reshape(TH, W, cout).astype(o_ref.dtype)


# ---------------------------------------------------------------------------
# Wrapper (NCHW in / NCHW out, like the PyTorch module).
# ---------------------------------------------------------------------------
def _fold_bn(conv_bias, gamma, beta, mean, var):
    scale = gamma / jnp.sqrt(var + EPS)
    bias = (conv_bias - mean) * scale + beta
    return scale, bias


def _pack_conv_weight(w_oihw):
    # OIHW -> HWIO -> (9*Cin, Cout).  Row index = (dy*3 + dx)*Cin + cin,
    # matching the kernel's im2col tap ordering.
    cout, cin, kh, kw = w_oihw.shape
    return jnp.transpose(w_oihw, (2, 3, 1, 0)).reshape(kh * kw * cin, cout)


@functools.partial(jax.jit, static_argnames=("tile_h",))
def vgg_block_forward(x_nchw, params, tile_h=None):
    x = jnp.transpose(x_nchw, (0, 2, 3, 1))          # NCHW -> NHWC (glue)
    B, H, W, cin = x.shape

    w1 = _pack_conv_weight(params["conv1_w"])
    s1, b1 = _fold_bn(params["conv1_b"], params["bn1_gamma"], params["bn1_beta"],
                      params["bn1_mean"], params["bn1_var"])
    w2 = _pack_conv_weight(params["conv2_w"])
    s2, b2 = _fold_bn(params["conv2_b"], params["bn2_gamma"], params["bn2_beta"],
                      params["bn2_mean"], params["bn2_var"])
    cmid = w1.shape[1]
    cout = w2.shape[1]

    if tile_h is None:
        tile_h = H if H <= 64 else 32
    tile_h = min(tile_h, H)
    if H % tile_h != 0:
        # TODO(synk): ragged last row tile not supported.
        raise ValueError(f"H={H} must be divisible by tile_h={tile_h}")
    n_th = H // tile_h

    out = pl.pallas_call(
        _vgg_block_kernel,
        out_shape=jax.ShapeDtypeStruct((B, H, W, cout), jnp.float32),
        grid=(B, n_th),
        in_specs=[
            # Full input plane per batch element; its block index does not
            # change with the h-tile index, so it stays resident in VMEM.
            pl.BlockSpec((1, H, W, cin), lambda b, t: (b, 0, 0, 0)),
            pl.BlockSpec((9 * cin, cmid), lambda b, t: (0, 0)),
            pl.BlockSpec((1, cmid), lambda b, t: (0, 0)),
            pl.BlockSpec((1, cmid), lambda b, t: (0, 0)),
            pl.BlockSpec((9 * cmid, cout), lambda b, t: (0, 0)),
            pl.BlockSpec((1, cout), lambda b, t: (0, 0)),
            pl.BlockSpec((1, cout), lambda b, t: (0, 0)),
            pl.BlockSpec(memory_space=pltpu.MemorySpace.SMEM),   # PReLU alpha
        ],
        out_specs=pl.BlockSpec((1, tile_h, W, cout), lambda b, t: (b, t, 0, 0)),
        scratch_shapes=[
            pltpu.VMEM((H + 4, W + 2, cin), jnp.float32),         # padded input
            pltpu.VMEM((tile_h + 2, W + 2, cmid), jnp.float32),   # padded conv1 out
        ],
        compiler_params=pltpu.CompilerParams(
            # Batch tiles are independent (megacore); the h-tile axis carries
            # the padded-input scratch, so it must stay sequential.
            dimension_semantics=("parallel", "arbitrary"),
            vmem_limit_bytes=48 * 1024 * 1024,
        ),
    )(x, w1, s1.reshape(1, cmid), b1.reshape(1, cmid),
      w2, s2.reshape(1, cout), b2.reshape(1, cout),
      params["prelu_a"].reshape(1).astype(jnp.float32))

    return jnp.transpose(out, (0, 3, 1, 2))          # NHWC -> NCHW (glue)


# ---------------------------------------------------------------------------
# Pure-JAX reference (same math, via lax.conv) for verification.
# ---------------------------------------------------------------------------
def _reference(x_nchw, params):
    def conv(x, w, b):
        y = jax.lax.conv_general_dilated(
            x, w, window_strides=(1, 1), padding=((1, 1), (1, 1)),
            dimension_numbers=("NCHW", "OIHW", "NCHW"))
        return y + b[None, :, None, None]

    def bn(x, g, bta, m, v):
        return (x - m[None, :, None, None]) / jnp.sqrt(v[None, :, None, None] + EPS) \
               * g[None, :, None, None] + bta[None, :, None, None]

    def prelu(x, a):
        return jnp.where(x > 0, x, a * x)

    a = params["prelu_a"][0]
    y = conv(x_nchw, params["conv1_w"], params["conv1_b"])
    y = bn(y, params["bn1_gamma"], params["bn1_beta"], params["bn1_mean"], params["bn1_var"])
    y = prelu(y, a)
    y = conv(y, params["conv2_w"], params["conv2_b"])
    y = bn(y, params["bn2_gamma"], params["bn2_beta"], params["bn2_mean"], params["bn2_var"])
    y = prelu(y, a)
    return y


def _init_params(key, cin, cmid, cout):
    ks = jax.random.split(key, 10)
    return {
        "conv1_w": 0.1 * jax.random.normal(ks[0], (cmid, cin, 3, 3), jnp.float32),
        "conv1_b": 0.1 * jax.random.normal(ks[1], (cmid,), jnp.float32),
        "bn1_gamma": 1.0 + 0.1 * jax.random.normal(ks[2], (cmid,), jnp.float32),
        "bn1_beta": 0.1 * jax.random.normal(ks[3], (cmid,), jnp.float32),
        "bn1_mean": 0.1 * jax.random.normal(ks[4], (cmid,), jnp.float32),
        "bn1_var": jnp.abs(1.0 + 0.1 * jax.random.normal(ks[5], (cmid,), jnp.float32)),
        "conv2_w": 0.1 * jax.random.normal(ks[6], (cout, cmid, 3, 3), jnp.float32),
        "conv2_b": 0.1 * jax.random.normal(ks[7], (cout,), jnp.float32),
        "bn2_gamma": 1.0 + 0.1 * jax.random.normal(ks[8], (cout,), jnp.float32),
        "bn2_beta": 0.1 * jax.random.normal(ks[9], (cout,), jnp.float32),
        "bn2_mean": jnp.zeros((cout,), jnp.float32),
        "bn2_var": jnp.ones((cout,), jnp.float32),
        "prelu_a": jnp.array([0.25], jnp.float32),   # nn.PReLU() default init
    }


if __name__ == "__main__":
    B, CIN, CMID, COUT, H, W = 2, 4, 8, 4, 16, 16
    key = jax.random.PRNGKey(0)
    kx, kp = jax.random.split(key)

    x = jax.random.normal(kx, (B, CIN, H, W), jnp.float32)   # NCHW like PyTorch
    params = _init_params(kp, CIN, CMID, COUT)

    # tile_h=8 -> 2 row tiles per batch element, exercising the halo logic.
    out = vgg_block_forward(x, params, tile_h=8)
    out = jax.block_until_ready(out)

    ref = _reference(x, params)
    assert out.shape == (B, COUT, H, W)
    assert jnp.allclose(out, ref, atol=2e-4, rtol=2e-4), "mismatch vs reference"

    print("KERNEL_OK")
</pallas_src>

<mosaic_0001>
module attributes {stable_mosaic.version = 11 : i64} {
  func.func @_vgg_block_kernel(%arg0: i32, %arg1: i32, %arg2: memref<1x16x16x4xf32, #tpu.memory_space<vmem>>, %arg3: memref<36x8xf32, #tpu.memory_space<vmem>>, %arg4: memref<1x8xf32, #tpu.memory_space<vmem>>, %arg5: memref<1x8xf32, #tpu.memory_space<vmem>>, %arg6: memref<72x4xf32, #tpu.memory_space<vmem>>, %arg7: memref<1x4xf32, #tpu.memory_space<vmem>>, %arg8: memref<1x4xf32, #tpu.memory_space<vmem>>, %arg9: memref<1xf32, #tpu.memory_space<smem>>, %arg10: memref<1x8x16x4xf32, #tpu.memory_space<vmem>>, %arg11: memref<20x18x4xf32, #tpu.memory_space<vmem>>, %arg12: memref<10x18x8xf32, #tpu.memory_space<vmem>>) attributes {dimension_semantics = [#tpu.dimension_semantics<parallel>, #tpu.dimension_semantics<arbitrary>], iteration_bounds = array<i64: 2, 2>, scalar_prefetch = 0 : i64, scratch_operands = 2 : i64, tpu.core_type = #tpu.core_type<tc>, window_params = [{transform_indices = @transform_0, window_bounds = array<i64: 1, 16, 16, 4>}, {pipeline_mode = #tpu.pipeline_mode<synchronous>, transform_indices = @transform_1, window_bounds = array<i64: 36, 8>}, {pipeline_mode = #tpu.pipeline_mode<synchronous>, transform_indices = @transform_2, window_bounds = array<i64: 1, 8>}, {pipeline_mode = #tpu.pipeline_mode<synchronous>, transform_indices = @transform_3, window_bounds = array<i64: 1, 8>}, {pipeline_mode = #tpu.pipeline_mode<synchronous>, transform_indices = @transform_4, window_bounds = array<i64: 72, 4>}, {pipeline_mode = #tpu.pipeline_mode<synchronous>, transform_indices = @transform_5, window_bounds = array<i64: 1, 4>}, {pipeline_mode = #tpu.pipeline_mode<synchronous>, transform_indices = @transform_6, window_bounds = array<i64: 1, 4>}, {transform_indices = @transform_7, window_bounds = array<i64: 1>}, {transform_indices = @transform_8, window_bounds = array<i64: 1, 8, 16, 4>}]} {
    %c0 = arith.constant 0 : index
    %0 = memref.load %arg9[%c0] : memref<1xf32, #tpu.memory_space<smem>>
    %c0_i32 = arith.constant 0 : i32
    %1 = arith.cmpi eq, %arg1, %c0_i32 : i32
    %2 = arith.extui %1 : i1 to i32
    %c0_i32_0 = arith.constant 0 : i32
    %3 = arith.cmpi ne, %2, %c0_i32_0 : i32
    scf.if %3 {
      %cst_81 = arith.constant 0.000000e+00 : f32
      %94 = vector.broadcast %cst_81 : f32 to vector<20x18x4xf32>
      %c0_82 = arith.constant 0 : index
      %c0_83 = arith.constant 0 : index
      %c0_84 = arith.constant 0 : index
      %95 = vector.load %arg11[%c0_82, %c0_83, %c0_84] : memref<20x18x4xf32, #tpu.memory_space<vmem>>, vector<20x18x4xf32>
      tpu.vector_store %arg11[%c0_82, %c0_83, %c0_84], %94 {strides = array<i32>} : memref<20x18x4xf32, #tpu.memory_space<vmem>>, vector<20x18x4xf32>,
      %c0_85 = arith.constant 0 : index
      %c0_86 = arith.constant 0 : index
      %c0_87 = arith.constant 0 : index
      %c0_88 = arith.constant 0 : index
      %96 = vector.load %arg2[%c0_85, %c0_86, %c0_87, %c0_88] : memref<1x16x16x4xf32, #tpu.memory_space<vmem>>, vector<1x16x16x4xf32>
      %97 = vector.shape_cast %96 : vector<1x16x16x4xf32> to vector<16x16x4xf32>
      %c2_89 = arith.constant 2 : index
      %c1_90 = arith.constant 1 : index
      %c0_91 = arith.constant 0 : index
      %98 = vector.load %arg11[%c2_89, %c1_90, %c0_91] : memref<20x18x4xf32, #tpu.memory_space<vmem>>, vector<16x16x4xf32>
      tpu.vector_store %arg11[%c2_89, %c1_90, %c0_91], %97 {strides = array<i32>} : memref<20x18x4xf32, #tpu.memory_space<vmem>>, vector<16x16x4xf32>,
    } else {
    }
    %c8_i32 = arith.constant 8 : i32
    %4 = arith.muli %arg1, %c8_i32 : i32
    %5 = tpu.assume_multiple %4, 8 : i32
    %c0_i32_1 = arith.constant 0 : i32
    %6 = arith.addi %5, %c0_i32_1 : i32
    %7 = arith.index_cast %6 : i32 to index
    %c0_2 = arith.constant 0 : index
    %c0_3 = arith.constant 0 : index
    %8 = vector.load %arg11[%7, %c0_2, %c0_3] : memref<20x18x4xf32, #tpu.memory_space<vmem>>, vector<10x16x4xf32>
    %c0_i32_4 = arith.constant 0 : i32
    %9 = arith.addi %5, %c0_i32_4 : i32
    %10 = arith.index_cast %9 : i32 to index
    %c1 = arith.constant 1 : index
    %c0_5 = arith.constant 0 : index
    %11 = vector.load %arg11[%10, %c1, %c0_5] : memref<20x18x4xf32, #tpu.memory_space<vmem>>, vector<10x16x4xf32>
    %c0_i32_6 = arith.constant 0 : i32
    %12 = arith.addi %5, %c0_i32_6 : i32
    %13 = arith.index_cast %12 : i32 to index
    %c2 = arith.constant 2 : index
    %c0_7 = arith.constant 0 : index
    %14 = vector.load %arg11[%13, %c2, %c0_7] : memref<20x18x4xf32, #tpu.memory_space<vmem>>, vector<10x16x4xf32>
    %c1_i32 = arith.constant 1 : i32
    %15 = arith.addi %5, %c1_i32 : i32
    %16 = arith.index_cast %15 : i32 to index
    %c0_8 = arith.constant 0 : index
    %c0_9 = arith.constant 0 : index
    %17 = vector.load %arg11[%16, %c0_8, %c0_9] : memref<20x18x4xf32, #tpu.memory_space<vmem>>, vector<10x16x4xf32>
    %c1_i32_10 = arith.constant 1 : i32
    %18 = arith.addi %5, %c1_i32_10 : i32
    %19 = arith.index_cast %18 : i32 to index
    %c1_11 = arith.constant 1 : index
    %c0_12 = arith.constant 0 : index
    %20 = vector.load %arg11[%19, %c1_11, %c0_12] : memref<20x18x4xf32, #tpu.memory_space<vmem>>, vector<10x16x4xf32>
    %c1_i32_13 = arith.constant 1 : i32
    %21 = arith.addi %5, %c1_i32_13 : i32
    %22 = arith.index_cast %21 : i32 to index
    %c2_14 = arith.constant 2 : index
    %c0_15 = arith.constant 0 : index
    %23 = vector.load %arg11[%22, %c2_14, %c0_15] : memref<20x18x4xf32, #tpu.memory_space<vmem>>, vector<10x16x4xf32>
    %c2_i32 = arith.constant 2 : i32
    %24 = arith.addi %5, %c2_i32 : i32
    %25 = arith.index_cast %24 : i32 to index
    %c0_16 = arith.constant 0 : index
    %c0_17 = arith.constant 0 : index
    %26 = vector.load %arg11[%25, %c0_16, %c0_17] : memref<20x18x4xf32, #tpu.memory_space<vmem>>, vector<10x16x4xf32>
    %c2_i32_18 = arith.constant 2 : i32
    %27 = arith.addi %5, %c2_i32_18 : i32
    %28 = arith.index_cast %27 : i32 to index
    %c1_19 = arith.constant 1 : index
    %c0_20 = arith.constant 0 : index
    %29 = vector.load %arg11[%28, %c1_19, %c0_20] : memref<20x18x4xf32, #tpu.memory_space<vmem>>, vector<10x16x4xf32>
    %c2_i32_21 = arith.constant 2 : i32
    %30 = arith.addi %5, %c2_i32_21 : i32
    %31 = arith.index_cast %30 : i32 to index
    %c2_22 = arith.constant 2 : index
    %c0_23 = arith.constant 0 : index
    %32 = vector.load %arg11[%31, %c2_22, %c0_23] : memref<20x18x4xf32, #tpu.memory_space<vmem>>, vector<10x16x4xf32>
    %33 = tpu.concatenate %8, %11, %14, %17, %20, %23, %26, %29, %32 in 2 : vector<10x16x4xf32>, vector<10x16x4xf32>, vector<10x16x4xf32>, vector<10x16x4xf32>, vector<10x16x4xf32>, vector<10x16x4xf32>, vector<10x16x4xf32>, vector<10x16x4xf32>, vector<10x16x4xf32> -> vector<10x16x36xf32>
    %34 = vector.shape_cast %33 : vector<10x16x36xf32> to vector<160x36xf32>
    %c0_24 = arith.constant 0 : index
    %c0_25 = arith.constant 0 : index
    %35 = vector.load %arg3[%c0_24, %c0_25] : memref<36x8xf32, #tpu.memory_space<vmem>>, vector<36x8xf32>
    %cst = arith.constant dense<0.000000e+00> : vector<160x8xf32>
    %36 = tpu.matmul %34, %35, %cst {dimension_numbers = #tpu.dot_dimension_numbers<[1], [0], [0], [1], [0, 0, 1, 1], [], []>} : vector<160x36xf32>, vector<36x8xf32>, vector<160x8xf32> -> vector<160x8xf32>
    %c0_26 = arith.constant 0 : index
    %c0_27 = arith.constant 0 : index
    %37 = vector.load %arg4[%c0_26, %c0_27] : memref<1x8xf32, #tpu.memory_space<vmem>>, vector<1x8xf32>
    %38 = vector.shape_cast %37 : vector<1x8xf32> to vector<8xf32>
    %39 = vector.shape_cast %38 : vector<8xf32> to vector<1x8xf32>
    %40 = vector.broadcast %39 : vector<1x8xf32> to vector<160x8xf32>
    %41 = arith.mulf %36, %40 : vector<160x8xf32>
    %c0_28 = arith.constant 0 : index
    %c0_29 = arith.constant 0 : index
    %42 = vector.load %arg5[%c0_28, %c0_29] : memref<1x8xf32, #tpu.memory_space<vmem>>, vector<1x8xf32>
    %43 = vector.shape_cast %42 : vector<1x8xf32> to vector<8xf32>
    %44 = vector.shape_cast %43 : vector<8xf32> to vector<1x8xf32>
    %45 = vector.broadcast %44 : vector<1x8xf32> to vector<160x8xf32>
    %46 = arith.addf %41, %45 : vector<160x8xf32>
    %cst_30 = arith.constant 0.000000e+00 : f32
    %47 = vector.broadcast %cst_30 : f32 to vector<160x8xf32>
    %48 = arith.cmpf ogt, %46, %47 : vector<160x8xf32>
    %49 = vector.broadcast %0 : f32 to vector<160x8xf32>
    %50 = arith.mulf %49, %46 : vector<160x8xf32>
    %51 = arith.select %48, %46, %50 : vector<160x8xi1>, vector<160x8xf32>
    %cst_31 = arith.constant 0.000000e+00 : f32
    %52 = vector.broadcast %cst_31 : f32 to vector<10x18x8xf32>
    %c0_32 = arith.constant 0 : index
    %c0_33 = arith.constant 0 : index
    %c0_34 = arith.constant 0 : index
    %53 = vector.load %arg12[%c0_32, %c0_33, %c0_34] : memref<10x18x8xf32, #tpu.memory_space<vmem>>, vector<10x18x8xf32>
    tpu.vector_store %arg12[%c0_32, %c0_33, %c0_34], %52 {strides = array<i32>} : memref<10x18x8xf32, #tpu.memory_space<vmem>>, vector<10x18x8xf32>,
    %54 = vector.shape_cast %51 : vector<160x8xf32> to vector<10x16x8xf32>
    %c0_35 = arith.constant 0 : index
    %c1_36 = arith.constant 1 : index
    %c0_37 = arith.constant 0 : index
    %55 = vector.load %arg12[%c0_35, %c1_36, %c0_37] : memref<10x18x8xf32, #tpu.memory_space<vmem>>, vector<10x16x8xf32>
    tpu.vector_store %arg12[%c0_35, %c1_36, %c0_37], %54 {strides = array<i32>} : memref<10x18x8xf32, #tpu.memory_space<vmem>>, vector<10x16x8xf32>,
    %c0_i32_38 = arith.constant 0 : i32
    %56 = arith.cmpi eq, %arg1, %c0_i32_38 : i32
    %57 = arith.extui %56 : i1 to i32
    %c0_i32_39 = arith.constant 0 : i32
    %58 = arith.cmpi ne, %57, %c0_i32_39 : i32
    scf.if %58 {
      %cst_81 = arith.constant 0.000000e+00 : f32
      %94 = vector.broadcast %cst_81 : f32 to vector<18x8xf32>
      %c0_82 = arith.constant 0 : index
      %c0_83 = arith.constant 0 : index
      %c0_84 = arith.constant 0 : index
      %95 = vector.load %arg12[%c0_82, %c0_83, %c0_84] : memref<10x18x8xf32, #tpu.memory_space<vmem>>, vector<1x18x8xf32>
      %96 = vector.shape_cast %95 : vector<1x18x8xf32> to vector<18x8xf32>
      %97 = vector.shape_cast %94 : vector<18x8xf32> to vector<1x18x8xf32>
      tpu.vector_store %arg12[%c0_82, %c0_83, %c0_84], %97 {strides = array<i32>} : memref<10x18x8xf32, #tpu.memory_space<vmem>>, vector<1x18x8xf32>,
    } else {
    }
    %c1_i32_40 = arith.constant 1 : i32
    %59 = arith.cmpi eq, %arg1, %c1_i32_40 : i32
    %60 = arith.extui %59 : i1 to i32
    %c0_i32_41 = arith.constant 0 : i32
    %61 = arith.cmpi ne, %60, %c0_i32_41 : i32
    scf.if %61 {
      %cst_81 = arith.constant 0.000000e+00 : f32
      %94 = vector.broadcast %cst_81 : f32 to vector<18x8xf32>
      %c9 = arith.constant 9 : index
      %c0_82 = arith.constant 0 : index
      %c0_83 = arith.constant 0 : index
      %95 = vector.load %arg12[%c9, %c0_82, %c0_83] : memref<10x18x8xf32, #tpu.memory_space<vmem>>, vector<1x18x8xf32>
      %96 = vector.shape_cast %95 : vector<1x18x8xf32> to vector<18x8xf32>
      %97 = vector.shape_cast %94 : vector<18x8xf32> to vector<1x18x8xf32>
      tpu.vector_store %arg12[%c9, %c0_82, %c0_83], %97 {strides = array<i32>} : memref<10x18x8xf32, #tpu.memory_space<vmem>>, vector<1x18x8xf32>,
    } else {
    }
    %c0_42 = arith.constant 0 : index
    %c0_43 = arith.constant 0 : index
    %c0_44 = arith.constant 0 : index
    %62 = vector.load %arg12[%c0_42, %c0_43, %c0_44] : memref<10x18x8xf32, #tpu.memory_space<vmem>>, vector<8x16x8xf32>
    %c0_45 = arith.constant 0 : index
    %c1_46 = arith.constant 1 : index
    %c0_47 = arith.constant 0 : index
    %63 = vector.load %arg12[%c0_45, %c1_46, %c0_47] : memref<10x18x8xf32, #tpu.memory_space<vmem>>, vector<8x16x8xf32>
    %c0_48 = arith.constant 0 : index
    %c2_49 = arith.constant 2 : index
    %c0_50 = arith.constant 0 : index
    %64 = vector.load %arg12[%c0_48, %c2_49, %c0_50] : memref<10x18x8xf32, #tpu.memory_space<vmem>>, vector<8x16x8xf32>
    %c1_51 = arith.constant 1 : index
    %c0_52 = arith.constant 0 : index
    %c0_53 = arith.constant 0 : index
    %65 = vector.load %arg12[%c1_51, %c0_52, %c0_53] : memref<10x18x8xf32, #tpu.memory_space<vmem>>, vector<8x16x8xf32>
    %c1_54 = arith.constant 1 : index
    %c1_55 = arith.constant 1 : index
    %c0_56 = arith.constant 0 : index
    %66 = vector.load %arg12[%c1_54, %c1_55, %c0_56] : memref<10x18x8xf32, #tpu.memory_space<vmem>>, vector<8x16x8xf32>
    %c1_57 = arith.constant 1 : index
    %c2_58 = arith.constant 2 : index
    %c0_59 = arith.constant 0 : index
    %67 = vector.load %arg12[%c1_57, %c2_58, %c0_59] : memref<10x18x8xf32, #tpu.memory_space<vmem>>, vector<8x16x8xf32>
    %c2_60 = arith.constant 2 : index
    %c0_61 = arith.constant 0 : index
    %c0_62 = arith.constant 0 : index
    %68 = vector.load %arg12[%c2_60, %c0_61, %c0_62] : memref<10x18x8xf32, #tpu.memory_space<vmem>>, vector<8x16x8xf32>
    %c2_63 = arith.constant 2 : index
    %c1_64 = arith.constant 1 : index
    %c0_65 = arith.constant 0 : index
    %69 = vector.load %arg12[%c2_63, %c1_64, %c0_65] : memref<10x18x8xf32, #tpu.memory_space<vmem>>, vector<8x16x8xf32>
    %c2_66 = arith.constant 2 : index
    %c2_67 = arith.constant 2 : index
    %c0_68 = arith.constant 0 : index
    %70 = vector.load %arg12[%c2_66, %c2_67, %c0_68] : memref<10x18x8xf32, #tpu.memory_space<vmem>>, vector<8x16x8xf32>
    %71 = tpu.concatenate %62, %63, %64, %65, %66, %67, %68, %69, %70 in 2 : vector<8x16x8xf32>, vector<8x16x8xf32>, vector<8x16x8xf32>, vector<8x16x8xf32>, vector<8x16x8xf32>, vector<8x16x8xf32>, vector<8x16x8xf32>, vector<8x16x8xf32>, vector<8x16x8xf32> -> vector<8x16x72xf32>
    %72 = vector.shape_cast %71 : vector<8x16x72xf32> to vector<128x72xf32>
    %c0_69 = arith.constant 0 : index
    %c0_70 = arith.constant 0 : index
    %73 = vector.load %arg6[%c0_69, %c0_70] : memref<72x4xf32, #tpu.memory_space<vmem>>, vector<72x4xf32>
    %cst_71 = arith.constant dense<0.000000e+00> : vector<128x4xf32>
    %74 = tpu.matmul %72, %73, %cst_71 {dimension_numbers = #tpu.dot_dimension_numbers<[1], [0], [0], [1], [0, 0, 1, 1], [], []>} : vector<128x72xf32>, vector<72x4xf32>, vector<128x4xf32> -> vector<128x4xf32>
    %c0_72 = arith.constant 0 : index
    %c0_73 = arith.constant 0 : index
    %75 = vector.load %arg7[%c0_72, %c0_73] : memref<1x4xf32, #tpu.memory_space<vmem>>, vector<1x4xf32>
    %76 = vector.shape_cast %75 : vector<1x4xf32> to vector<4xf32>
    %77 = vector.shape_cast %76 : vector<4xf32> to vector<1x4xf32>
    %78 = vector.broadcast %77 : vector<1x4xf32> to vector<128x4xf32>
    %79 = arith.mulf %74, %78 : vector<128x4xf32>
    %c0_74 = arith.constant 0 : index
    %c0_75 = arith.constant 0 : index
    %80 = vector.load %arg8[%c0_74, %c0_75] : memref<1x4xf32, #tpu.memory_space<vmem>>, vector<1x4xf32>
    %81 = vector.shape_cast %80 : vector<1x4xf32> to vector<4xf32>
    %82 = vector.shape_cast %81 : vector<4xf32> to vector<1x4xf32>
    %83 = vector.broadcast %82 : vector<1x4xf32> to vector<128x4xf32>
    %84 = arith.addf %79, %83 : vector<128x4xf32>
    %cst_76 = arith.constant 0.000000e+00 : f32
    %85 = vector.broadcast %cst_76 : f32 to vector<128x4xf32>
    %86 = arith.cmpf ogt, %84, %85 : vector<128x4xf32>
    %87 = vector.broadcast %0 : f32 to vector<128x4xf32>
    %88 = arith.mulf %87, %84 : vector<128x4xf32>
    %89 = arith.select %86, %84, %88 : vector<128x4xi1>, vector<128x4xf32>
    %90 = vector.shape_cast %89 : vector<128x4xf32> to vector<8x16x4xf32>
    %c0_77 = arith.constant 0 : index
    %c0_78 = arith.constant 0 : index
    %c0_79 = arith.constant 0 : index
    %c0_80 = arith.constant 0 : index
    %91 = vector.load %arg10[%c0_77, %c0_78, %c0_79, %c0_80] : memref<1x8x16x4xf32, #tpu.memory_space<vmem>>, vector<1x8x16x4xf32>
    %92 = vector.shape_cast %91 : vector<1x8x16x4xf32> to vector<8x16x4xf32>
    %93 = vector.shape_cast %90 : vector<8x16x4xf32> to vector<1x8x16x4xf32>
    tpu.vector_store %arg10[%c0_77, %c0_78, %c0_79, %c0_80], %93 {strides = array<i32>} : memref<1x8x16x4xf32, #tpu.memory_space<vmem>>, vector<1x8x16x4xf32>,
    return
  }
  func.func @transform_0(%arg0: i32, %arg1: i32) -> (i32, i32, i32, i32) {
    %c0_i32 = arith.constant 0 : i32
    %c0_i32_0 = arith.constant 0 : i32
    %c0_i32_1 = arith.constant 0 : i32
    %c0_i32_2 = arith.constant 0 : i32
    return %arg0, %c0_i32, %c0_i32_0, %c0_i32_1 : i32, i32, i32, i32
  }
  func.func @transform_1(%arg0: i32, %arg1: i32) -> (i32, i32) {
    %c0_i32 = arith.constant 0 : i32
    %c0_i32_0 = arith.constant 0 : i32
    %c0_i32_1 = arith.constant 0 : i32
    return %c0_i32, %c0_i32_0 : i32, i32
  }
  func.func @transform_2(%arg0: i32, %arg1: i32) -> (i32, i32) {
    %c0_i32 = arith.constant 0 : i32
    %c0_i32_0 = arith.constant 0 : i32
    %c0_i32_1 = arith.constant 0 : i32
    return %c0_i32, %c0_i32_0 : i32, i32
  }
  func.func @transform_3(%arg0: i32, %arg1: i32) -> (i32, i32) {
    %c0_i32 = arith.constant 0 : i32
    %c0_i32_0 = arith.constant 0 : i32
    %c0_i32_1 = arith.constant 0 : i32
    return %c0_i32, %c0_i32_0 : i32, i32
  }
  func.func @transform_4(%arg0: i32, %arg1: i32) -> (i32, i32) {
    %c0_i32 = arith.constant 0 : i32
    %c0_i32_0 = arith.constant 0 : i32
    %c0_i32_1 = arith.constant 0 : i32
    return %c0_i32, %c0_i32_0 : i32, i32
  }
  func.func @transform_5(%arg0: i32, %arg1: i32) -> (i32, i32) {
    %c0_i32 = arith.constant 0 : i32
    %c0_i32_0 = arith.constant 0 : i32
    %c0_i32_1 = arith.constant 0 : i32
    return %c0_i32, %c0_i32_0 : i32, i32
  }
  func.func @transform_6(%arg0: i32, %arg1: i32) -> (i32, i32) {
    %c0_i32 = arith.constant 0 : i32
    %c0_i32_0 = arith.constant 0 : i32
    %c0_i32_1 = arith.constant 0 : i32
    return %c0_i32, %c0_i32_0 : i32, i32
  }
  func.func @transform_7(%arg0: i32, %arg1: i32) -> i32 {
    %c0_i32 = arith.constant 0 : i32
    %c0_i32_0 = arith.constant 0 : i32
    return %c0_i32 : i32
  }
  func.func @transform_8(%arg0: i32, %arg1: i32) -> (i32, i32, i32, i32) {
    %c0_i32 = arith.constant 0 : i32
    %c0_i32_0 = arith.constant 0 : i32
    %c0_i32_1 = arith.constant 0 : i32
    return %arg0, %arg1, %c0_i32, %c0_i32_0 : i32, i32, i32, i32
  }
}

</mosaic_0001>

<bundles_post_ra>
// kernel: vgg_block_forward.1
= control target key start
LH: loop header
LB: loop body
LE: loop exit
PB: predicated region body
PF: predicated region fallthrough
CT: control target
= control target key end

     0   :  { %s3579_s29 = smov 0   ;;  %s3581_s30 = smov 0   ;;  %s5095_s0 = inlined_call_operand.vmem [shape: f32[2,16,16,4], index: 0, kind: input, shape index: {}]   ;;  %s5096_s1 = inlined_call_operand.vmem [shape: f32[36,8], index: 1, kind: input, shape index: {}]   ;;  %s5097_s2 = inlined_call_operand.vmem [shape: f32[1,8], index: 2, kind: input, shape index: {}]   ;;  %s5098_s3 = inlined_call_operand.vmem [shape: f32[1,8], index: 3, kind: input, shape index: {}]   ;;  %s5099_s4 = inlined_call_operand.vmem [shape: f32[72,4], index: 4, kind: input, shape index: {}]   ;;  %s5100_s5 = inlined_call_operand.vmem [shape: f32[1,4], index: 5, kind: input, shape index: {}]   ;;  %s5101_s6 = inlined_call_operand.vmem [shape: f32[1,4], index: 6, kind: input, shape index: {}]   ;;  %s5102_s7 = inlined_call_operand.<no memory space> [shape: f32[1], index: 7, kind: input, shape index: {}]   ;;  %s5103_s8 = inlined_call_operand.vmem [shape: f32[2,16,16,4], index: 8, kind: output, shape index: {}]  }
   0x1   :  { %13 = sst [smem:[#allocation4]] %s5102_s7  ;;  %s3583_s9 = smov 0  }
   0x2   :  { %s3585_s10 = smov 0   ;;  %s3587_s11 = smov 0  }
   0x3 LB: > { %s28_s7 = sadd.s32 1, %s3505_s9  ;;  %s31_s12 = sadd.s32 1, %s3509_s10  ;;  %s3513_s11 = sphi %s3587_s11, %s19_s11   ;;  %s3509_s10 = sphi %s3585_s10, %s5107_s10   ;;  %s3505_s9 = sphi %s3583_s9, %s5106_s9   ;;  %s3501_s30 = sphi %s3581_s30, %s5105_s30   ;;  %s3497_s29 = sphi %s3579_s29, %s5104_s29  }
   0x4   : > { %p29_p0 = scmp.ge.s32.totalorder %s28_s7, 2  ;;  %p3083_p1 = scmp.ge.s32.totalorder %s3513_s11, 1 }
   0x5   : > { %p277_p2 = scmp.lt.s32.totalorder %s3513_s11, 5 }
   0x6   : > { %s5109_s7 = smov (%p29_p0, %s28_s7), 0  ;;  %s5111_s12 = smov (!%p29_p0, %s31_s12), %s3509_s10 }
   0x7   : > { %p278_p3 = pnand %p3083_p1, %p277_p2  ;;  %p33_p4 = scmp.ge.s32.totalorder %s5111_s12, 2 }
   0x8   : > { %p316_p5 = scmp.lt.s32.totalorder (!%p278_p3), %s3501_s30, 1  ;;  %s3086_s13 = sshll.u32 (!%p278_p3), %s3497_s29, 3 }
   0x9   : > { %s5113_s12 = smov (%p33_p4, %s5111_s12), 0  ;;  %281 = sbr.rel (%p278_p3) target bundleno = 1328 (0x530), region = 52 }
   0xa   : > { %p324_p6 = scmp.lt.s32.totalorder (!%p278_p3), %s3086_s13, 15  ;;  %s3612_s14 = sld [smem:[#allocation4]] (!%p278_p3) }
   0xb   : > { %p3090_p7 = scmp.ne.s32.totalorder (!%p278_p3), %s3497_s29, 0 }
  0x10   : > { %s5115_s30 = smov (!%p316_p5, %s3501_s30), 1  ;;  %s5117_s13 = smov (!%p324_p6, %s3086_s13), 15 }
  0x11   : > { %s3262_s15 = sshll.u32 %s5115_s30, 8  ;;  %s3088_s16 = sshll.u32 %s5115_s30, 5  ;;  %vm337_vm0 = vcmask (!%p3090_p7), 31744   ;;  %vm340_vm1 = vcmask (!%p3090_p7), 25600   ;;  %v3515_v3 = vmov (!%p3090_p7), 0.0  }
  0x12   : > { %s3617_s19 = scalar_lea.vmem %s5095_s0, %s3262_s15  ;;  %s3087_s20 = sshll.u32 %s5117_s13, 1  ;;  %345 = vst.msk [vmem:[#allocation2 + $0x30] sm:$0xff] (!%p3090_p7), %vm337_vm0, %v3515_v3  ;;  %338 = vst.msk [vmem:[#allocation2] sm:$0xff] (!%p3090_p7), %vm337_vm0, %v3515_v3 }
  0x13   : > { %s328_s21 = sadd.s32 %s3088_s16, %s3087_s20  ;;  %336 = sbr.rel (%p3090_p7) target bundleno = 65 (0x41), region = 56  ;;  %v3628_v0 = vld [vmem:[%s3617_s19] sm:$0xff] (!%p3090_p7)  ;;  %v3631_v1 = vld [vmem:[%s3617_s19 + $0x8] sm:$0xff] (!%p3090_p7)  ;;  %v3634_v2 = vld [vmem:[%s3617_s19 + $0x10] sm:$0xff] (!%p3090_p7)  ;;  %339 = vst.msk [vmem:[#allocation2 + $0x8] sm:$0xff] (!%p3090_p7), %vm337_vm0, %v3515_v3 }
  0x14   : > { %s3089_s22 = sshll.u32 %s328_s21, 3  ;;  %342 = vst.msk [vmem:[#allocation2 + $0x18] sm:$0xff] (!%p3090_p7), %vm337_vm0, %v3515_v3  ;;  %343 = vst.msk [vmem:[#allocation2 + $0x20] sm:$0xff] (!%p3090_p7), %vm337_vm0, %v3515_v3  ;;  %v402_v4 = vld [vmem:[%s3617_s19 + $0x18] sm:$0xff] (!%p3090_p7)  ;;  %v403_v5 = vld [vmem:[%s3617_s19 + $0x20] sm:$0xff] (!%p3090_p7) }
  0x15   : > { %s3622_s25 = scalar_lea.vmem %s5103_s8, %s3089_s22  ;;  %346 = vst.msk [vmem:[#allocation2 + $0x38] sm:$0xff] (!%p3090_p7), %vm337_vm0, %v3515_v3  ;;  %348 = vst.msk [vmem:[#allocation2 + $0x48] sm:$0xff] (!%p3090_p7), %vm337_vm0, %v3515_v3  ;;  %v404_v6 = vld [vmem:[%s3617_s19 + $0x28] sm:$0xff] (!%p3090_p7)  ;;  %v405_v7 = vld [vmem:[%s3617_s19 + $0x30] sm:$0xff] (!%p3090_p7) }
  0x16   : > { %349 = vst.msk [vmem:[#allocation2 + $0x50] sm:$0xff] (!%p3090_p7), %vm337_vm0, %v3515_v3  ;;  %351 = vst.msk [vmem:[#allocation2 + $0x60] sm:$0xff] (!%p3090_p7), %vm337_vm0, %v3515_v3  ;;  %v406_v8 = vld [vmem:[%s3617_s19 + $0x38] sm:$0xff] (!%p3090_p7)  ;;  %v407_v9 = vld [vmem:[%s3617_s19 + $0x40] sm:$0xff] (!%p3090_p7) }
  0x17   : > { %352 = vst.msk [vmem:[#allocation2 + $0x68] sm:$0xff] (!%p3090_p7), %vm337_vm0, %v3515_v3  ;;  %354 = vst.msk [vmem:[#allocation2 + $0x78] sm:$0xff] (!%p3090_p7), %vm337_vm0, %v3515_v3  ;;  %v408_v10 = vld [vmem:[%s3617_s19 + $0x48] sm:$0xff] (!%p3090_p7)  ;;  %v409_v11 = vld [vmem:[%s3617_s19 + $0x50] sm:$0xff] (!%p3090_p7) }
  0x18   : > { %355 = vst.msk [vmem:[#allocation2 + $0x80] sm:$0xff] (!%p3090_p7), %vm337_vm0, %v3515_v3  ;;  %357 = vst.msk [vmem:[#allocation2 + $0x90] sm:$0xff] (!%p3090_p7), %vm337_vm0, %v3515_v3  ;;  %v410_v12 = vld [vmem:[%s3617_s19 + $0x58] sm:$0xff] (!%p3090_p7)  ;;  %v411_v13 = vld [vmem:[%s3617_s19 + $0x60] sm:$0xff] (!%p3090_p7) }
  0x19   : > { %358 = vst.msk [vmem:[#allocation2 + $0x98] sm:$0xff] (!%p3090_p7), %vm337_vm0, %v3515_v3  ;;  %360 = vst.msk [vmem:[#allocation2 + $0xa8] sm:$0xff] (!%p3090_p7), %vm337_vm0, %v3515_v3  ;;  %v412_v14 = vld [vmem:[%s3617_s19 + $0x68] sm:$0xff] (!%p3090_p7)  ;;  %v413_v15 = vld [vmem:[%s3617_s19 + $0x70] sm:$0xff] (!%p3090_p7) }
  0x1a   : > { %361 = vst.msk [vmem:[#allocation2 + $0xb0] sm:$0xff] %vm337_vm0, %v3515_v3  ;;  %363 = vst.msk [vmem:[#allocation2 + $0xc0] sm:$0xff] %vm337_vm0, %v3515_v3  ;;  %v414_v16 = vld [vmem:[%s3617_s19 + $0x78] sm:$0xff]  ;;  %v415_v17 = vld [vmem:[%s3617_s19 + $0x80] sm:$0xff] }
  0x1b   : > { %364 = vst.msk [vmem:[#allocation2 + $0xc8] sm:$0xff] %vm337_vm0, %v3515_v3  ;;  %366 = vst.msk [vmem:[#allocation2 + $0xd8] sm:$0xff] %vm337_vm0, %v3515_v3  ;;  %v416_v18 = vld [vmem:[%s3617_s19 + $0x88] sm:$0xff]  ;;  %v417_v19 = vld [vmem:[%s3617_s19 + $0x90] sm:$0xff] }
  0x1c   : > { %367 = vst.msk [vmem:[#allocation2 + $0xe0] sm:$0xff] %vm337_vm0, %v3515_v3  ;;  %369 = vst.msk [vmem:[#allocation2 + $0xf0] sm:$0xff] %vm337_vm0, %v3515_v3  ;;  %v418_v20 = vld [vmem:[%s3617_s19 + $0x98] sm:$0xff]  ;;  %v419_v21 = vld [vmem:[%s3617_s19 + $0xa0] sm:$0xff] }
  0x1d   : > { %370 = vst.msk [vmem:[#allocation2 + $0xf8] sm:$0xff] %vm337_vm0, %v3515_v3  ;;  %372 = vst.msk [vmem:[#allocation2 + $0x108] sm:$0xff] %vm337_vm0, %v3515_v3  ;;  %v420_v22 = vld [vmem:[%s3617_s19 + $0xa8] sm:$0xff]  ;;  %v421_v23 = vld [vmem:[%s3617_s19 + $0xb0] sm:$0xff] }
  0x1e   : > { %373 = vst.msk [vmem:[#allocation2 + $0x110] sm:$0xff] %vm337_vm0, %v3515_v3  ;;  %375 = vst.msk [vmem:[#allocation2 + $0x120] sm:$0xff] %vm337_vm0, %v3515_v3  ;;  %v422_v24 = vld [vmem:[%s3617_s19 + $0xb8] sm:$0xff]  ;;  %v423_v25 = vld [vmem:[%s3617_s19 + $0xc0] sm:$0xff] }
  0x1f   : > { %376 = vst.msk [vmem:[#allocation2 + $0x128] sm:$0xff] %vm337_vm0, %v3515_v3  ;;  %378 = vst.msk [vmem:[#allocation2 + $0x138] sm:$0xff] %vm337_vm0, %v3515_v3  ;;  %v424_v26 = vld [vmem:[%s3617_s19 + $0xc8] sm:$0xff]  ;;  %v425_v27 = vld [vmem:[%s3617_s19 + $0xd0] sm:$0xff] }
  0x20   : > { %379 = vst.msk [vmem:[#allocation2 + $0x140] sm:$0xff] %vm337_vm0, %v3515_v3  ;;  %381 = vst.msk [vmem:[#allocation2 + $0x150] sm:$0xff] %vm337_vm0, %v3515_v3  ;;  %v426_v28 = vld [vmem:[%s3617_s19 + $0xd8] sm:$0xff]  ;;  %v427_v29 = vld [vmem:[%s3617_s19 + $0xe0] sm:$0xff] }
  0x21   : > { %382 = vst.msk [vmem:[#allocation2 + $0x158] sm:$0xff] %vm337_vm0, %v3515_v3  ;;  %384 = vst.msk [vmem:[#allocation2 + $0x168] sm:$0xff] %vm337_vm0, %v3515_v3  ;;  %v428_v30 = vld [vmem:[%s3617_s19 + $0xe8] sm:$0xff]  ;;  %v429_v31 = vld [vmem:[%s3617_s19 + $0xf0] sm:$0xff] }
  0x22   : > { %385 = vst.msk [vmem:[#allocation2 + $0x170] sm:$0xff] %vm337_vm0, %v3515_v3  ;;  %387 = vst.msk [vmem:[#allocation2 + $0x180] sm:$0xff] %vm337_vm0, %v3515_v3  ;;  %v430_v32 = vld [vmem:[%s3617_s19 + $0xf8] sm:$0xff] }
  0x23   : > { %388 = vst.msk [vmem:[#allocation2 + $0x188] sm:$0xff] %vm337_vm0, %v3515_v3  ;;  %390 = vst.msk [vmem:[#allocation2 + $0x198] sm:$0xff] %vm337_vm0, %v3515_v3 }
  0x24   : > { %391 = vst.msk [vmem:[#allocation2 + $0x1a0] sm:$0xff] %vm337_vm0, %v3515_v3  ;;  %393 = vst.msk [vmem:[#allocation2 + $0x1b0] sm:$0xff] %vm337_vm0, %v3515_v3 }
  0x25   : > { %394 = vst.msk [vmem:[#allocation2 + $0x1b8] sm:$0xff] %vm337_vm0, %v3515_v3  ;;  %396 = vst.msk [vmem:[#allocation2 + $0x1c8] sm:$0xff] %vm337_vm0, %v3515_v3 }
  0x26   : > { %397 = vst.msk [vmem:[#allocation2 + $0x1d0] sm:$0xff] %vm337_vm0, %v3515_v3  ;;  %432 = vst.msk [vmem:[#allocation2 + $0x31] sm:$0xff] %vm337_vm0, %v3628_v0 }
  0x27   : > { %347 = vst.msk [vmem:[#allocation2 + $0x40] sm:$0x3] %vm340_vm1, %v3515_v3  ;;  %341 = vst.msk [vmem:[#allocation2 + $0x10] sm:$0x3] %vm340_vm1, %v3515_v3 }
  0x28   : > { %344 = vst.msk [vmem:[#allocation2 + $0x28] sm:$0x3] %vm340_vm1, %v3515_v3  ;;  %350 = vst.msk [vmem:[#allocation2 + $0x58] sm:$0x3] %vm340_vm1, %v3515_v3 }
  0x29   : > { %353 = vst.msk [vmem:[#allocation2 + $0x70] sm:$0x3] %vm340_vm1, %v3515_v3  ;;  %356 = vst.msk [vmem:[#allocation2 + $0x88] sm:$0x3] %vm340_vm1, %v3515_v3 }
  0x2a   : > { %359 = vst.msk [vmem:[#allocation2 + $0xa0] sm:$0x3] %vm340_vm1, %v3515_v3  ;;  %362 = vst.msk [vmem:[#allocation2 + $0xb8] sm:$0x3] %vm340_vm1, %v3515_v3 }
  0x2b   : > { %365 = vst.msk [vmem:[#allocation2 + $0xd0] sm:$0x3] %vm340_vm1, %v3515_v3  ;;  %368 = vst.msk [vmem:[#allocation2 + $0xe8] sm:$0x3] %vm340_vm1, %v3515_v3 }
  0x2c   : > { %371 = vst.msk [vmem:[#allocation2 + $0x100] sm:$0x3] %vm340_vm1, %v3515_v3  ;;  %374 = vst.msk [vmem:[#allocation2 + $0x118] sm:$0x3] %vm340_vm1, %v3515_v3 }
  0x2d   : > { %377 = vst.msk [vmem:[#allocation2 + $0x130] sm:$0x3] %vm340_vm1, %v3515_v3  ;;  %380 = vst.msk [vmem:[#allocation2 + $0x148] sm:$0x3] %vm340_vm1, %v3515_v3 }
  0x2e   : > { %383 = vst.msk [vmem:[#allocation2 + $0x160] sm:$0x3] %vm340_vm1, %v3515_v3  ;;  %386 = vst.msk [vmem:[#allocation2 + $0x178] sm:$0x3] %vm340_vm1, %v3515_v3 }
  0x2f   : > { %389 = vst.msk [vmem:[#allocation2 + $0x190] sm:$0x3] %vm340_vm1, %v3515_v3  ;;  %392 = vst.msk [vmem:[#allocation2 + $0x1a8] sm:$0x3] %vm340_vm1, %v3515_v3 }
  0x30   : > { %395 = vst.msk [vmem:[#allocation2 + $0x1c0] sm:$0x3] %vm340_vm1, %v3515_v3  ;;  %398 = vst.msk [vmem:[#allocation2 + $0x1d8] sm:$0x3] %vm340_vm1, %v3515_v3 }
  0x31   : > { %433 = vst.msk [vmem:[#allocation2 + $0x39] sm:$0xff] %vm337_vm0, %v3631_v1  ;;  %434 = vst.msk [vmem:[#allocation2 + $0x49] sm:$0xff] %vm337_vm0, %v3634_v2 }
  0x32   : > { %435 = vst.msk [vmem:[#allocation2 + $0x51] sm:$0xff] %vm337_vm0, %v402_v4  ;;  %436 = vst.msk [vmem:[#allocation2 + $0x61] sm:$0xff] %vm337_vm0, %v403_v5 }
  0x33   : > { %437 = vst.msk [vmem:[#allocation2 + $0x69] sm:$0xff] %vm337_vm0, %v404_v6  ;;  %438 = vst.msk [vmem:[#allocation2 + $0x79] sm:$0xff] %vm337_vm0, %v405_v7 }
  0x34   : > { %439 = vst.msk [vmem:[#allocation2 + $0x81] sm:$0xff] %vm337_vm0, %v406_v8  ;;  %440 = vst.msk [vmem:[#allocation2 + $0x91] sm:$0xff] %vm337_vm0, %v407_v9 }
  0x35   : > { %441 = vst.msk [vmem:[#allocation2 + $0x99] sm:$0xff] %vm337_vm0, %v408_v10  ;;  %442 = vst.msk [vmem:[#allocation2 + $0xa9] sm:$0xff] %vm337_vm0, %v409_v11 }
  0x36   : > { %443 = vst.msk [vmem:[#allocation2 + $0xb1] sm:$0xff] %vm337_vm0, %v410_v12  ;;  %444 = vst.msk [vmem:[#allocation2 + $0xc1] sm:$0xff] %vm337_vm0, %v411_v13 }
  0x37   : > { %445 = vst.msk [vmem:[#allocation2 + $0xc9] sm:$0xff] %vm337_vm0, %v412_v14  ;;  %446 = vst.msk [vmem:[#allocation2 + $0xd9] sm:$0xff] %vm337_vm0, %v413_v15 }
  0x38   : > { %447 = vst.msk [vmem:[#allocation2 + $0xe1] sm:$0xff] %vm337_vm0, %v414_v16  ;;  %448 = vst.msk [vmem:[#allocation2 + $0xf1] sm:$0xff] %vm337_vm0, %v415_v17 }
  0x39   : > { %449 = vst.msk [vmem:[#allocation2 + $0xf9] sm:$0xff] %vm337_vm0, %v416_v18  ;;  %450 = vst.msk [vmem:[#allocation2 + $0x109] sm:$0xff] %vm337_vm0, %v417_v19 }
  0x3a   : > { %451 = vst.msk [vmem:[#allocation2 + $0x111] sm:$0xff] %vm337_vm0, %v418_v20  ;;  %452 = vst.msk [vmem:[#allocation2 + $0x121] sm:$0xff] %vm337_vm0, %v419_v21 }
  0x3b   : > { %453 = vst.msk [vmem:[#allocation2 + $0x129] sm:$0xff] %vm337_vm0, %v420_v22  ;;  %454 = vst.msk [vmem:[#allocation2 + $0x139] sm:$0xff] %vm337_vm0, %v421_v23 }
  0x3c   : > { %455 = vst.msk [vmem:[#allocation2 + $0x141] sm:$0xff] %vm337_vm0, %v422_v24  ;;  %456 = vst.msk [vmem:[#allocation2 + $0x151] sm:$0xff] %vm337_vm0, %v423_v25 }
  0x3d   : > { %457 = vst.msk [vmem:[#allocation2 + $0x159] sm:$0xff] %vm337_vm0, %v424_v26  ;;  %458 = vst.msk [vmem:[#allocation2 + $0x169] sm:$0xff] %vm337_vm0, %v425_v27 }
  0x3e   : > { %459 = vst.msk [vmem:[#allocation2 + $0x171] sm:$0xff] %vm337_vm0, %v426_v28  ;;  %460 = vst.msk [vmem:[#allocation2 + $0x181] sm:$0xff] %vm337_vm0, %v427_v29 }
  0x3f   : > { %461 = vst.msk [vmem:[#allocation2 + $0x189] sm:$0xff] %vm337_vm0, %v428_v30  ;;  %462 = vst.msk [vmem:[#allocation2 + $0x199] sm:$0xff] %vm337_vm0, %v429_v31 }
  0x40   : > { %463 = vst.msk [vmem:[#allocation2 + $0x1a1] sm:$0xff] %vm337_vm0, %v430_v32 }
  0x41 PF: > { %s3092_s26 = smul.u32 192, %s3497_s29  ;;  %s3516_s28 = smov 8   ;;  %v1461_v44 = vld [vmem:[%s5096_s1] sm:$0xff]  ;;  %v1462_v45 = vld [vmem:[%s5096_s1 + $0x8] sm:$0xff]  ;;  %v1463_v47 = vld [vmem:[%s5096_s1 + $0x10] sm:$0xff]  ;;  %vm1527_vm2 = vcmask 1043456  }
  0x42   : > { %s3517_s30 = smov 4   ;;  %s3518_s13 = smov 12   ;;  %v3395_v46 = vpack.c.bf16 %v1462_v45, %v1461_v44  ;;  %v1464_v48 = vld [vmem:[%s5096_s1 + $0x18] sm:$0xff]  ;;  %v1465_v52 = vld [vmem:[%s5096_s1 + $0x20] sm:$0xf]  ;;  %vm1293_vm3 = vcmask 31744  }
  0x43   : > { %s3761_s27 = scalar_lea.vmem [#allocation2], %s3092_s26  ;;  %s3519_s15 = smov 16   ;;  %v3399_v51 = vpack.c.bf16 %v1464_v48, %v1463_v47  ;;  %vm1314_vm4 = vcmask 64512   ;;  %vm1335_vm5 = vcmask 97280   ;;  %vm1356_vm6 = vcmask 130048  }
  0x44   : > { %s3520_s16 = smov 20   ;;  %s3521_s21 = smov 24   ;;  %3396 = vmatprep.subr.bf16.mxu0 %v3395_v46  ;;  %vm1377_vm7 = vcmask 162816   ;;  %vm1398_vm8 = vcmask 195584   ;;  %vm1419_vm9 = vcmask 228352   ;;  %vm1440_vm10 = vcmask 261120  }
  0x45   : > { %3398 = vmatpush3.bf16.msra.mxu0 %v3395_v46  ;;  %s3522_s17 = smov 28   ;;  %s3523_s20 = smov 32   ;;  %vm1466_vm11 = vcmask 293888   ;;  %vm1813_vm12 = vcmask 58368  }
  0x46   : > { %3400 = vmatprep.subr.bf16.mxu0 %v3399_v51 }
  0x47   : > { %v507_v33 = vld [vmem:[%s3761_s27 + $0x2] sm:$0xff]  ;;  %v508_v35 = vld [vmem:[%s3761_s27 + $0xa] sm:$0xff]  ;;  %v3775_v38 = vld [vmem:[%s3761_s27 + $0x18] sm:$0xff] }
  0x48   : > { %v487_v34 = vld [vmem:[%s3761_s27 + $0x1] sm:$0xff]  ;;  %753 = vrot.lane.b32.xlu1 %v507_v33, %s3516_s28  ;;  %v488_v36 = vld [vmem:[%s3761_s27 + $0x9] sm:$0xff]  ;;  %v489_v39 = vld [vmem:[%s3761_s27 + $0x19] sm:$0xff] }
  0x49   : > { %673 = vrot.lane.b32.xlu0 %v487_v34, %s3517_s30  ;;  %v3772_v37 = vld [vmem:[%s3761_s27 + $0x20] sm:$0xff]  ;;  %v3791_v42 = vld [vmem:[%s3761_s27 + $0x30] sm:$0xff]  ;;  %v3814_v50 = vld [vmem:[%s3761_s27 + $0x38] sm:$0xff]  ;;  %3402 = vmatpush3.bf16.msra.mxu0 %v3399_v51 }
  0x4a   : > { %v3135_v40 = vld [vmem:[%s3761_s27 + $0x1a] sm:$0xff]  ;;  %v3136_v43 = vld [vmem:[%s3761_s27 + $0x22] sm:$0xff]  ;;  %v3177_v49 = vld [vmem:[%s3761_s27 + $0x31] sm:$0xff]  ;;  %3321 = vmatprep.subr.msk.mxu0 %vm1527_vm2, %v1465_v52 }
  0x4b   : > { %v3116_v41 = vld [vmem:[%s3761_s27 + $0x21] sm:$0xff]  ;;  %v3197_v53 = vld [vmem:[%s3761_s27 + $0x32] sm:$0xff]  ;;  %v3179_v57 = vld [vmem:[%s3761_s27 + $0x49] sm:$0xff] }
  0x4c   : > { %755 = vrot.lane.b32.xlu1 %v508_v35, %s3516_s28  ;;  %v3178_v54 = vld [vmem:[%s3761_s27 + $0x39] sm:$0xff]  ;;  %v3837_v56 = vld [vmem:[%s3761_s27 + $0x48] sm:$0xff]  ;;  %v3847_v58 = vld [vmem:[%s3761_s27 + $0x50] sm:$0xff] }
  0x4d   : > { %675 = vrot.lane.b32.xlu0 %v488_v36, %s3517_s30  ;;  %3322 = vmatpush3.msk.msra.mxu0 %vm1527_vm2, %v1465_v52  ;;  %v3198_v55 = vld [vmem:[%s3761_s27 + $0x3a] sm:$0xff]  ;;  %v3199_v59 = vld [vmem:[%s3761_s27 + $0x4a] sm:$0xff]  ;;  %v3200_v61 = vld [vmem:[%s3761_s27 + $0x52] sm:$0xff] }
  0x4e   : > { %v3180_v60 = vld [vmem:[%s3761_s27 + $0x51] sm:$0xff]  ;;  %v3867_v62 = vld [vmem:[%s3761_s27 + $0x60] sm:$0xff]  ;;  %v3877_v0 = vld [vmem:[%s3761_s27 + $0x68] sm:$0xff] }
  0x4f   : > { %v3181_v63 = vld [vmem:[%s3761_s27 + $0x61] sm:$0xff]  ;;  %v3182_v2 = vld [vmem:[%s3761_s27 + $0x69] sm:$0xff]  ;;  %v3897_v6 = vld [vmem:[%s3761_s27 + $0x78] sm:$0xff] }
  0x50   : > { %835 = vrot.lane.b32.xlu1 %v3772_v37, %s3518_s13  ;;  %v3201_v1 = vld [vmem:[%s3761_s27 + $0x62] sm:$0xff]  ;;  %v3202_v3 = vld [vmem:[%s3761_s27 + $0x6a] sm:$0xff]  ;;  %v3183_v11 = vld [vmem:[%s3761_s27 + $0x79] sm:$0xff] }
  0x51   : > { %833 = vrot.lane.b32.xlu0 %v3775_v38, %s3518_s13  ;;  %v3911_v12 = vld [vmem:[%s3761_s27 + $0x80] sm:$0xff]  ;;  %v3944_v31 = vld [vmem:[%s3761_s27 + $0x90] sm:$0xff]  ;;  %v468_v35 = vld [vmem:[%s3761_s27 + $0x8] sm:$0xff] }
  0x52   : > { %v3203_v17 = vld [vmem:[%s3761_s27 + $0x7a] sm:$0xff]  ;;  %v3204_v23 = vld [vmem:[%s3761_s27 + $0x82] sm:$0xff]  ;;  %v3185_v48 = vld [vmem:[%s3761_s27 + $0x91] sm:$0xff] }
  0x53   : > { %v3184_v18 = vld [vmem:[%s3761_s27 + $0x81] sm:$0xff] }
  0x54   : > { %677 = vrot.lane.b32.xlu1 %v489_v39, %s3517_s30  ;;  %v467_v26 = vld [vmem:[%s3761_s27] sm:$0xff] }
  0x55   : > { %913 = vrot.lane.b32.xlu0 %v489_v39, %s3519_s15 }
  0x58   : > { %993 = vrot.lane.b32.xlu1 %v3135_v40, %s3520_s16 }
  0x59   : > { %915 = vrot.lane.b32.xlu0 %v3116_v41, %s3519_s15 }
  0x5c   : > { %757 = vrot.lane.b32.xlu1 %v3135_v40, %s3516_s28 }
  0x5d   : > { %679 = vrot.lane.b32.xlu0 %v3116_v41, %s3517_s30 }
  0x60   : > { %1073 = vrot.lane.b32.xlu1 %v3791_v42, %s3521_s21 }
  0x61   : > { %995 = vrot.lane.b32.xlu0 %v3136_v43, %s3520_s16 }
  0x64   : > { %837 = vrot.lane.b32.xlu1 %v3791_v42, %s3518_s13 }
  0x65   : > { %759 = vrot.lane.b32.xlu0 %v3136_v43, %s3516_s28 }
  0x68   : > { %1153 = vrot.lane.b32.xlu1 %v3177_v49, %s3522_s17 }
  0x69   : > { %1075 = vrot.lane.b32.xlu0 %v3814_v50, %s3521_s21 }
  0x6c   : > { %917 = vrot.lane.b32.xlu1 %v3177_v49, %s3519_s15 }
  0x6d   : > { %839 = vrot.lane.b32.xlu0 %v3814_v50, %s3518_s13 }
  0x70   : > { %1233 = vrot.lane.b32.xlu1 %v3197_v53, %s3523_s20 }
  0x71   : > { %1155 = vrot.lane.b32.xlu0 %v3178_v54, %s3522_s17 }
  0x74   : > { %919 = vrot.lane.b32.xlu1 %v3178_v54, %s3519_s15 }
  0x75   : > { %681 = vrot.lane.b32.xlu0 %v3177_v49, %s3517_s30  ;;  %v3969_v49 = vld [vmem:[%s3761_s27 + $0x98] sm:$0xff] }
  0x78   : > { %1235 = vrot.lane.b32.xlu1 %v3198_v55, %s3523_s20 }
  0x79   : > { %997 = vrot.lane.b32.xlu0 %v3197_v53, %s3520_s16 }
  0x7c   : > { %761 = vrot.lane.b32.xlu1 %v3197_v53, %s3516_s28 }
  0x7d   : > { %683 = vrot.lane.b32.xlu0 %v3178_v54, %s3517_s30 }
  0x80   : > { %1077 = vrot.lane.b32.xlu1 %v3837_v56, %s3521_s21 }
  0x81   : > { %999 = vrot.lane.b32.xlu0 %v3198_v55, %s3520_s16 }
  0x84   : > { %841 = vrot.lane.b32.xlu1 %v3837_v56, %s3518_s13 }
  0x85   : > { %763 = vrot.lane.b32.xlu0 %v3198_v55, %s3516_s28 }
  0x88   : > { %1157 = vrot.lane.b32.xlu1 %v3179_v57, %s3522_s17 }
  0x89   : > { %1079 = vrot.lane.b32.xlu0 %v3847_v58, %s3521_s21 }
  0x8c   : > { %921 = vrot.lane.b32.xlu1 %v3179_v57, %s3519_s15 }
  0x8d   : > { %843 = vrot.lane.b32.xlu0 %v3847_v58, %s3518_s13 }
  0x90   : > { %1237 = vrot.lane.b32.xlu1 %v3199_v59, %s3523_s20 }
  0x91   : > { %1159 = vrot.lane.b32.xlu0 %v3180_v60, %s3522_s17 }
  0x94   : > { %923 = vrot.lane.b32.xlu1 %v3180_v60, %s3519_s15 }
  0x95   : > { %685 = vrot.lane.b32.xlu0 %v3179_v57, %s3517_s30 }
  0x98   : > { %1239 = vrot.lane.b32.xlu1 %v3200_v61, %s3523_s20 }
  0x99   : > { %1001 = vrot.lane.b32.xlu0 %v3199_v59, %s3520_s16 }
  0x9c   : > { %765 = vrot.lane.b32.xlu1 %v3199_v59, %s3516_s28 }
  0x9d   : > { %687 = vrot.lane.b32.xlu0 %v3180_v60, %s3517_s30 }
  0xa0   : > { %1081 = vrot.lane.b32.xlu1 %v3867_v62, %s3521_s21 }
  0xa1   : > { %1003 = vrot.lane.b32.xlu0 %v3200_v61, %s3520_s16 }
  0xa4   : > { %845 = vrot.lane.b32.xlu1 %v3867_v62, %s3518_s13 }
  0xa5   : > { %767 = vrot.lane.b32.xlu0 %v3200_v61, %s3516_s28 }
  0xa8   : > { %1161 = vrot.lane.b32.xlu1 %v3181_v63, %s3522_s17 }
  0xa9   : > { %1083 = vrot.lane.b32.xlu0 %v3877_v0, %s3521_s21 }
  0xac   : > { %925 = vrot.lane.b32.xlu1 %v3181_v63, %s3519_s15 }
  0xad   : > { %847 = vrot.lane.b32.xlu0 %v3877_v0, %s3518_s13 }
  0xb0   : > { %1241 = vrot.lane.b32.xlu1 %v3201_v1, %s3523_s20 }
  0xb1   : > { %1163 = vrot.lane.b32.xlu0 %v3182_v2, %s3522_s17 }
  0xb4   : > { %927 = vrot.lane.b32.xlu1 %v3182_v2, %s3519_s15 }
  0xb5   : > { %689 = vrot.lane.b32.xlu0 %v3181_v63, %s3517_s30 }
  0xb8   : > { %1243 = vrot.lane.b32.xlu1 %v3202_v3, %s3523_s20 }
  0xb9   : > { %1005 = vrot.lane.b32.xlu0 %v3201_v1, %s3520_s16 }
  0xba   : > { %v754_v4 = vpop.permute.xlu1 %753 }
  0xbb   : > { %v674_v5 = vpop.permute.xlu0 %673 }
  0xbc   : > { %769 = vrot.lane.b32.xlu1 %v3201_v1, %s3516_s28  ;;  %v1294_v27 = vsel %vm1293_vm3, %v467_v26, %v674_v5  ;;  %v3205_v1 = vld [vmem:[%s3761_s27 + $0x92] sm:$0xff] }
  0xbd   : > { %691 = vrot.lane.b32.xlu0 %v3182_v2, %s3517_s30  ;;  %v1315_v30 = vsel %vm1314_vm4, %v1294_v27, %v754_v4  ;;  %v3186_v2 = vld [vmem:[%s3761_s27 + $0x99] sm:$0xff] }
  0xbe   : > { %v3899_v7 = vpop.permute.xlu1 %755 }
  0xbf   : > { %v676_v8 = vpop.permute.xlu0 %675 }
  0xc0   : > { %1085 = vrot.lane.b32.xlu1 %v3897_v6, %s3521_s21  ;;  %v1295_v41 = vsel %vm1293_vm3, %v468_v35, %v676_v8  ;;  %v3206_v8 = vld [vmem:[%s3761_s27 + $0x9a] sm:$0xff] }
  0xc1   : > { %1007 = vrot.lane.b32.xlu0 %v3202_v3, %s3520_s16  ;;  %v1316_v47 = vsel %vm1314_vm4, %v1295_v41, %v3899_v7 }
  0xc2   : > { %v3904_v9 = vpop.permute.xlu1 %835 }
  0xc3   : > { %v834_v10 = vpop.permute.xlu0 %833  ;;  %v1337_v51 = vsel %vm1335_vm5, %v1316_v47, %v3904_v9 }
  0xc4   : > { %849 = vrot.lane.b32.xlu1 %v3897_v6, %s3518_s13  ;;  %v1336_v32 = vsel %vm1335_vm5, %v1315_v30, %v834_v10  ;;  %v3187_v30 = vld [vmem:[%s3761_s27 + $0xa9] sm:$0xff] }
  0xc5   : > { %771 = vrot.lane.b32.xlu0 %v3202_v3, %s3516_s28 }
  0xc6   : > { %v3913_v13 = vpop.permute.xlu1 %677 }
  0xc7   : > { %v914_v14 = vpop.permute.xlu0 %913 }
  0xc8   : > { %1165 = vrot.lane.b32.xlu1 %v3183_v11, %s3522_s17  ;;  %v1357_v36 = vsel %vm1356_vm6, %v1336_v32, %v914_v14  ;;  %v4038_v32 = vld [vmem:[%s3761_s27 + $0xb0] sm:$0xff] }
  0xc9   : > { %1087 = vrot.lane.b32.xlu0 %v3911_v12, %s3521_s21 }
  0xca   : > { %v994_v15 = vpop.permute.xlu1 %993 }
  0xcb   : > { %v916_v16 = vpop.permute.xlu0 %915  ;;  %v1378_v39 = vsel %vm1377_vm7, %v1357_v36, %v994_v15  ;;  %v1296_v15 = vsel %vm1293_vm3, %v3775_v38, %v3913_v13 }
  0xcc   : > { %929 = vrot.lane.b32.xlu1 %v3183_v11, %s3519_s15  ;;  %v1358_v54 = vsel %vm1356_vm6, %v1337_v51, %v916_v16  ;;  %v3208_v51 = vld [vmem:[%s3761_s27 + $0xb2] sm:$0xff] }
  0xcd   : > { %851 = vrot.lane.b32.xlu0 %v3911_v12, %s3518_s13 }
  0xce   : > { %v3923_v19 = vpop.permute.xlu1 %757 }
  0xcf   : > { %v3925_v20 = vpop.permute.xlu0 %679  ;;  %v1317_v16 = vsel %vm1314_vm4, %v1296_v15, %v3923_v19  ;;  %v3189_v15 = vld [vmem:[%s3761_s27 + $0xc1] sm:$0xff] }
  0xd0   : > { %1245 = vrot.lane.b32.xlu1 %v3203_v17, %s3523_s20 }
  0xd1   : > { %1167 = vrot.lane.b32.xlu0 %v3184_v18, %s3522_s17 }
  0xd2   : > { %v1074_v21 = vpop.permute.xlu1 %1073 }
  0xd3   : > { %v996_v22 = vpop.permute.xlu0 %995  ;;  %v1399_v40 = vsel %vm1398_vm8, %v1378_v39, %v1074_v21 }
  0xd4   : > { %931 = vrot.lane.b32.xlu1 %v3184_v18, %s3519_s15  ;;  %v1379_v55 = vsel %vm1377_vm7, %v1358_v54, %v996_v22 }
  0xd5   : > { %693 = vrot.lane.b32.xlu0 %v3183_v11, %s3517_s30 }
  0xd6   : > { %v3932_v24 = vpop.permute.xlu1 %837 }
  0xd7   : > { %v3934_v25 = vpop.permute.xlu0 %759 }
  0xd8   : > { %1247 = vrot.lane.b32.xlu1 %v3204_v23, %s3523_s20 }
  0xd9   : > { %1009 = vrot.lane.b32.xlu0 %v3203_v17, %s3520_s16 }
  0xda   : > { %v1154_v28 = vpop.permute.xlu1 %1153 }
  0xdb   : > { %v1076_v29 = vpop.permute.xlu0 %1075  ;;  %v1420_v43 = vsel %vm1419_vm9, %v1399_v40, %v1154_v28  ;;  %v1297_v28 = vsel %vm1293_vm3, %v3772_v37, %v3925_v20 }
  0xdc   : > { %773 = vrot.lane.b32.xlu1 %v3203_v17, %s3516_s28  ;;  %v1400_v57 = vsel %vm1398_vm8, %v1379_v55, %v1076_v29  ;;  %v4012_v17 = vld [vmem:[%s3761_s27 + $0xa8] sm:$0xff]  ;;  %v1318_v29 = vsel %vm1314_vm4, %v1297_v28, %v3934_v25 }
  0xdd   : > { %695 = vrot.lane.b32.xlu0 %v3184_v18, %s3517_s30  ;;  %v1338_v18 = vsel %vm1335_vm5, %v1317_v16, %v3932_v24  ;;  %v4106_v16 = vld [vmem:[%s3761_s27 + $0xc8] sm:$0xff] }
  0xde   : > { %v3947_v33 = vpop.permute.xlu1 %917 }
  0xdf   : > { %v3949_v34 = vpop.permute.xlu0 %839  ;;  %v1359_v38 = vsel %vm1356_vm6, %v1338_v18, %v3947_v33 }
  0xe0   : > { %1089 = vrot.lane.b32.xlu1 %v3944_v31, %s3521_s21  ;;  %v1339_v33 = vsel %vm1335_vm5, %v1318_v29, %v3949_v34 }
  0xe1   : > { %1011 = vrot.lane.b32.xlu0 %v3204_v23, %s3520_s16 }
  0xe2   : > { %v1234_v44 = vpop.permute.xlu1 %1233 }
  0xe3   : > { %v1156_v45 = vpop.permute.xlu0 %1155  ;;  %v1441_v46 = vsel %vm1440_vm10, %v1420_v43, %v1234_v44  ;;  %v3207_v43 = vld [vmem:[%s3761_s27 + $0xaa] sm:$0xff] }
  0xe4   : > { %853 = vrot.lane.b32.xlu1 %v3944_v31, %s3518_s13  ;;  %3323 = vmatprep.mubr.msk.f32.mxu0 %vm1466_vm11, %v1441_v46  ;;  %v1421_v59 = vsel %vm1419_vm9, %v1400_v57, %v1156_v45  ;;  %v3188_v44 = vld [vmem:[%s3761_s27 + $0xb1] sm:$0xff] }
  0xe5   : > { %775 = vrot.lane.b32.xlu0 %v3204_v23, %s3516_s28 }
  0xe6   : > { %v920_v52 = vpop.permute.xlu1 %919 }
  0xe7   : > { %v3973_v53 = vpop.permute.xlu0 %681  ;;  %v1360_v20 = vsel %vm1356_vm6, %v1339_v33, %v920_v52  ;;  %v3210_v33 = vld [vmem:[%s3761_s27 + $0xca] sm:$0xff] }
  0xe8   : > { %1169 = vrot.lane.b32.xlu1 %v3185_v48, %s3522_s17 }
  0xe9   : > { %1091 = vrot.lane.b32.xlu0 %v3969_v49, %s3521_s21 }
  0xea   : > { %v1236_v60 = vpop.permute.xlu1 %1235 }
  0xeb   : > { %v998_v61 = vpop.permute.xlu0 %997  ;;  %v1442_v63 = vsel %vm1440_vm10, %v1421_v59, %v1236_v60  ;;  %v1298_v59 = vsel %vm1293_vm3, %v3791_v42, %v3973_v53 }
  0xec   : > { %933 = vrot.lane.b32.xlu1 %v3185_v48, %s3519_s15  ;;  %3324 = vmatmul.mubr.msk.f32.vlgmr.msra.gmra.mrb[0].mxu0 %vm1466_vm11, %v1442_v63  ;;  %v1380_v13 = vsel %vm1377_vm7, %v1359_v38, %v998_v61  ;;  %v4081_v61 = vld [vmem:[%s3761_s27 + $0xc0] sm:$0xff] }
  0xed   : > { %855 = vrot.lane.b32.xlu0 %v3969_v49, %s3518_s13 }
  0xee   : > { %v3989_v3 = vpop.permute.xlu1 %761 }
  0xef   : > { %v3991_v4 = vpop.permute.xlu0 %683  ;;  %v1319_v60 = vsel %vm1314_vm4, %v1298_v59, %v3989_v3  ;;  %v3191_v59 = vld [vmem:[%s3761_s27 + $0xd9] sm:$0xff] }
  0xf0   : > { %1249 = vrot.lane.b32.xlu1 %v3205_v1, %s3523_s20 }
  0xf1   : > { %1171 = vrot.lane.b32.xlu0 %v3186_v2, %s3522_s17 }
  0xf2   : > { %v1078_v5 = vpop.permute.xlu1 %1077 }
  0xf3   : > { %v1000_v7 = vpop.permute.xlu0 %999  ;;  %v1401_v19 = vsel %vm1398_vm8, %v1380_v13, %v1078_v5 }
  0xf4   : > { %935 = vrot.lane.b32.xlu1 %v3186_v2, %s3519_s15  ;;  %v1381_v36 = vsel %vm1377_vm7, %v1360_v20, %v1000_v7 }
  0xf5   : > { %697 = vrot.lane.b32.xlu0 %v3185_v48, %s3517_s30 }
  0xf6   : > { %v3998_v9 = vpop.permute.xlu1 %841 }
  0xf7   : > { %v4000_v10 = vpop.permute.xlu0 %763  ;;  %v1340_v63 = vsel %vm1335_vm5, %v1319_v60, %v3998_v9  ;;  %v4180_v60 = vld [vmem:[%s3761_s27 + $0xe0] sm:$0xff] }
  0xf8   : > { %1251 = vrot.lane.b32.xlu1 %v3206_v8, %s3523_s20 }
  0xf9   : > { %1013 = vrot.lane.b32.xlu0 %v3205_v1, %s3520_s16 }
  0xfa   : > { %v1158_v11 = vpop.permute.xlu1 %1157 }
  0xfb   : > { %v1080_v14 = vpop.permute.xlu0 %1079  ;;  %v1422_v23 = vsel %vm1419_vm9, %v1401_v19, %v1158_v11  ;;  %v1299_v11 = vsel %vm1293_vm3, %v3814_v50, %v3991_v4 }
  0xfc   : > { %777 = vrot.lane.b32.xlu1 %v3205_v1, %s3516_s28  ;;  %v1402_v25 = vsel %vm1398_vm8, %v1381_v36, %v1080_v14  ;;  %v1320_v14 = vsel %vm1314_vm4, %v1299_v11, %v4000_v10 }
  0xfd   : > { %699 = vrot.lane.b32.xlu0 %v3186_v2, %s3517_s30 }
  0xfe   : > { %v922_v21 = vpop.permute.xlu1 %921 }
  0xff   : > { %v4016_v22 = vpop.permute.xlu0 %843  ;;  %v1361_v5 = vsel %vm1356_vm6, %v1340_v63, %v922_v21 }
 0x100   : > { %1093 = vrot.lane.b32.xlu1 %v4012_v17, %s3521_s21  ;;  %v1341_v18 = vsel %vm1335_vm5, %v1320_v14, %v4016_v22 }
 0x101   : > { %1015 = vrot.lane.b32.xlu0 %v3206_v8, %s3520_s16 }
 0x102   : > { %v1238_v24 = vpop.permute.xlu1 %1237 }
 0x103   : > { %v1160_v26 = vpop.permute.xlu0 %1159  ;;  %v1443_v27 = vsel %vm1440_vm10, %v1422_v23, %v1238_v24  ;;  %v3209_v24 = vld [vmem:[%s3761_s27 + $0xc2] sm:$0xff] }
 0x104   : > { %857 = vrot.lane.b32.xlu1 %v4012_v17, %s3518_s13  ;;  %3326 = vmatprep.mubr.msk.f32.mxu0 %vm1466_vm11, %v1443_v27  ;;  %v1423_v39 = vsel %vm1419_vm9, %v1402_v25, %v1160_v26  ;;  %v3190_v26 = vld [vmem:[%s3761_s27 + $0xc9] sm:$0xff] }
 0x105   : > { %779 = vrot.lane.b32.xlu0 %v3206_v8, %s3516_s28 }
 0x106   : > { %v924_v35 = vpop.permute.xlu1 %923 }
 0x107   : > { %v4042_v37 = vpop.permute.xlu0 %685  ;;  %v1362_v4 = vsel %vm1356_vm6, %v1341_v18, %v924_v35 }
 0x108   : > { %1173 = vrot.lane.b32.xlu1 %v3187_v30, %s3522_s17 }
 0x109   : > { %1095 = vrot.lane.b32.xlu0 %v4038_v32, %s3521_s21 }
 0x10a   : > { %v1240_v40 = vpop.permute.xlu1 %1239 }
 0x10b   : > { %v1002_v34 = vpop.permute.xlu0 %1001  ;;  %v1444_v41 = vsel %vm1440_vm10, %v1423_v39, %v1240_v40  ;;  %v1300_v39 = vsel %vm1293_vm3, %v3837_v56, %v4042_v37 }
 0x10c   : > { %937 = vrot.lane.b32.xlu1 %v3187_v30, %s3519_s15  ;;  %3327 = vmatmul.mubr.msk.f32.gmra.mrb[2].mxu0 %vm1466_vm11, %v1444_v41  ;;  %v1382_v42 = vsel %vm1377_vm7, %v1361_v5, %v1002_v34  ;;  %v4153_v34 = vld [vmem:[%s3761_s27 + $0xd8] sm:$0xff] }
 0x10d   : > { %859 = vrot.lane.b32.xlu0 %v4038_v32, %s3518_s13 }
 0x10e   : > { %v4058_v45 = vpop.permute.xlu1 %765 }
 0x10f   : > { %v4060_v46 = vpop.permute.xlu0 %687  ;;  %v1321_v40 = vsel %vm1314_vm4, %v1300_v39, %v4058_v45 }
 0x110   : > { %1253 = vrot.lane.b32.xlu1 %v3207_v43, %s3523_s20 }
 0x111   : > { %1175 = vrot.lane.b32.xlu0 %v3188_v44, %s3522_s17 }
 0x112   : > { %v1082_v47 = vpop.permute.xlu1 %1081 }
 0x113   : > { %v1004_v48 = vpop.permute.xlu0 %1003  ;;  %v1403_v53 = vsel %vm1398_vm8, %v1382_v42, %v1082_v47 }
 0x114   : > { %939 = vrot.lane.b32.xlu1 %v3188_v44, %s3519_s15  ;;  %v1383_v38 = vsel %vm1377_vm7, %v1362_v4, %v1004_v48 }
 0x115   : > { %701 = vrot.lane.b32.xlu0 %v3187_v30, %s3517_s30 }
 0x116   : > { %v4067_v52 = vpop.permute.xlu1 %845 }
 0x117   : > { %v4069_v54 = vpop.permute.xlu0 %767  ;;  %v1342_v41 = vsel %vm1335_vm5, %v1321_v40, %v4067_v52  ;;  %v3193_v40 = vld [vmem:[%s3761_s27 + $0xf1] sm:$0xff] }
 0x118   : > { %1255 = vrot.lane.b32.xlu1 %v3208_v51, %s3523_s20 }
 0x119   : > { %1017 = vrot.lane.b32.xlu0 %v3207_v43, %s3520_s16 }
 0x11a   : > { %v1162_v55 = vpop.permute.xlu1 %1161 }
 0x11b   : > { %v1084_v57 = vpop.permute.xlu0 %1083  ;;  %v1424_v3 = vsel %vm1419_vm9, %v1403_v53, %v1162_v55  ;;  %v1301_v55 = vsel %vm1293_vm3, %v3847_v58, %v4060_v46  ;;  %v3524_v46 = vmov 0.0  }
 0x11c   : > { %781 = vrot.lane.b32.xlu1 %v3207_v43, %s3516_s28  ;;  %v1404_v10 = vsel %vm1398_vm8, %v1383_v38, %v1084_v57  ;;  %v1322_v57 = vsel %vm1314_vm4, %v1301_v55, %v4069_v54  ;;  %1812 = vst.msk [vmem:[#allocation3 + $0x8] sm:$0xff] %vm1314_vm4, %v3524_v46  ;;  %1811 = vst.msk [vmem:[#allocation3] sm:$0xff] %vm1314_vm4, %v3524_v46 }
 0x11d   : > { %703 = vrot.lane.b32.xlu0 %v3188_v44, %s3517_s30  ;;  %1814 = vst.msk [vmem:[#allocation3 + $0x10] sm:$0x3] %vm1813_vm12, %v3524_v46  ;;  %1817 = vst.msk [vmem:[#allocation3 + $0x28] sm:$0x3] %vm1813_vm12, %v3524_v46 }
 0x11e   : > { %v926_v1 = vpop.permute.xlu1 %925  ;;  %1815 = vst.msk [vmem:[#allocation3 + $0x18] sm:$0xff] %vm1314_vm4, %v3524_v46  ;;  %1816 = vst.msk [vmem:[#allocation3 + $0x20] sm:$0xff] %vm1314_vm4, %v3524_v46 }
 0x11f   : > { %v4085_v2 = vpop.permute.xlu0 %847  ;;  %v1363_v56 = vsel %vm1356_vm6, %v1342_v41, %v926_v1  ;;  %1818 = vst.msk [vmem:[#allocation3 + $0x30] sm:$0xff] %vm1314_vm4, %v3524_v46  ;;  %1819 = vst.msk [vmem:[#allocation3 + $0x38] sm:$0xff] %vm1314_vm4, %v3524_v46  ;;  %v3174_v41 = vld [vmem:[%s3761_s27 + $0xf8] sm:$0xff] }
 0x120   : > { %1097 = vrot.lane.b32.xlu1 %v4081_v61, %s3521_s21  ;;  %v1343_v63 = vsel %vm1335_vm5, %v1322_v57, %v4085_v2  ;;  %1820 = vst.msk [vmem:[#allocation3 + $0x40] sm:$0x3] %vm1813_vm12, %v3524_v46  ;;  %1823 = vst.msk [vmem:[#allocation3 + $0x58] sm:$0x3] %vm1813_vm12, %v3524_v46 }
 0x121   : > { %1019 = vrot.lane.b32.xlu0 %v3208_v51, %s3520_s16  ;;  %1821 = vst.msk [vmem:[#allocation3 + $0x48] sm:$0xff] %vm1314_vm4, %v3524_v46  ;;  %1822 = vst.msk [vmem:[#allocation3 + $0x50] sm:$0xff] %vm1314_vm4, %v3524_v46 }
 0x122   : > { %v1242_v7 = vpop.permute.xlu1 %1241  ;;  %1824 = vst.msk [vmem:[#allocation3 + $0x60] sm:$0xff] %vm1314_vm4, %v3524_v46  ;;  %1825 = vst.msk [vmem:[#allocation3 + $0x68] sm:$0xff] %vm1314_vm4, %v3524_v46 }
 0x123   : > { %v1164_v8 = vpop.permute.xlu0 %1163  ;;  %v1445_v9 = vsel %vm1440_vm10, %v1424_v3, %v1242_v7  ;;  %1826 = vst.msk [vmem:[#allocation3 + $0x70] sm:$0x3] %vm1813_vm12, %v3524_v46  ;;  %1829 = vst.msk [vmem:[#allocation3 + $0x88] sm:$0x3] %vm1813_vm12, %v3524_v46 }
 0x124   : > { %861 = vrot.lane.b32.xlu1 %v4081_v61, %s3518_s13  ;;  %3329 = vmatprep.mubr.msk.f32.mxu0 %vm1466_vm11, %v1445_v9  ;;  %v1425_v13 = vsel %vm1419_vm9, %v1404_v10, %v1164_v8  ;;  %1827 = vst.msk [vmem:[#allocation3 + $0x78] sm:$0xff] %vm1314_vm4, %v3524_v46  ;;  %1828 = vst.msk [vmem:[#allocation3 + $0x80] sm:$0xff] %vm1314_vm4, %v3524_v46  ;;  %v3211_v8 = vld [vmem:[%s3761_s27 + $0xda] sm:$0xff] }
 0x125   : > { %783 = vrot.lane.b32.xlu0 %v3208_v51, %s3516_s28  ;;  %1830 = vst.msk [vmem:[#allocation3 + $0x90] sm:$0xff] %vm1314_vm4, %v3524_v46  ;;  %1831 = vst.msk [vmem:[#allocation3 + $0x98] sm:$0xff] %vm1314_vm4, %v3524_v46  ;;  %v3192_v9 = vld [vmem:[%s3761_s27 + $0xe1] sm:$0xff] }
 0x126   : > { %v928_v21 = vpop.permute.xlu1 %927  ;;  %1832 = vst.msk [vmem:[#allocation3 + $0xa0] sm:$0x3] %vm1813_vm12, %v3524_v46  ;;  %1835 = vst.msk [vmem:[#allocation3 + $0xb8] sm:$0x3] %vm1813_vm12, %v3524_v46 }
 0x127   : > { %v4110_v50 = vpop.permute.xlu0 %689  ;;  %v1364_v58 = vsel %vm1356_vm6, %v1343_v63, %v928_v21  ;;  %1833 = vst.msk [vmem:[#allocation3 + $0xa8] sm:$0xff] %vm1314_vm4, %v3524_v46  ;;  %1834 = vst.msk [vmem:[#allocation3 + $0xb0] sm:$0xff] %vm1314_vm4, %v3524_v46  ;;  %v3212_v21 = vld [vmem:[%s3761_s27 + $0xe2] sm:$0xff] }
 0x128   : > { %1177 = vrot.lane.b32.xlu1 %v3189_v15, %s3522_s17  ;;  %1836 = vst.msk [vmem:[#allocation3 + $0xc0] sm:$0xff] %vm1314_vm4, %v3524_v46  ;;  %1837 = vst.msk [vmem:[#allocation3 + $0xc8] sm:$0xff] %vm1314_vm4, %v3524_v46 }
 0x129   : > { %1099 = vrot.lane.b32.xlu0 %v4106_v16, %s3521_s21  ;;  %1838 = vst.msk [vmem:[#allocation3 + $0xd0] sm:$0x3] %vm1813_vm12, %v3524_v46  ;;  %1841 = vst.msk [vmem:[#allocation3 + $0xe8] sm:$0x3] %vm1813_vm12, %v3524_v46 }
 0x12a   : > { %v1244_v19 = vpop.permute.xlu1 %1243  ;;  %1839 = vst.msk [vmem:[#allocation3 + $0xd8] sm:$0xff] %vm1314_vm4, %v3524_v46  ;;  %1840 = vst.msk [vmem:[#allocation3 + $0xe0] sm:$0xff] %vm1314_vm4, %v3524_v46 }
 0x12b   : > { %v1006_v22 = vpop.permute.xlu0 %1005  ;;  %v1446_v23 = vsel %vm1440_vm10, %v1425_v13, %v1244_v19  ;;  %v1302_v19 = vsel %vm1293_vm3, %v3867_v62, %v4110_v50 }
 0x12c   : > { %941 = vrot.lane.b32.xlu1 %v3189_v15, %s3519_s15  ;;  %3330 = vmatmul.mubr.msk.f32.gmra.mrb[4].mxu0 %vm1466_vm11, %v1446_v23  ;;  %v1384_v37 = vsel %vm1377_vm7, %v1363_v56, %v1006_v22  ;;  %v3173_v23 = vld [vmem:[%s3761_s27 + $0xf0] sm:$0xff] }
 0x12d   : > { %863 = vrot.lane.b32.xlu0 %v4106_v16, %s3518_s13 }
 0x12e   : > { %v4126_v27 = vpop.permute.xlu1 %769 }
 0x12f   : > { %v4128_v28 = vpop.permute.xlu0 %691  ;;  %v1323_v22 = vsel %vm1314_vm4, %v1302_v19, %v4126_v27  ;;  %v3215_v19 = vld [vmem:[%s3761_s27 + $0x10a] sm:$0xff] }
 0x130   : > { %1257 = vrot.lane.b32.xlu1 %v3209_v24, %s3523_s20 }
 0x131   : > { %1179 = vrot.lane.b32.xlu0 %v3190_v26, %s3522_s17 }
 0x132   : > { %v1086_v29 = vpop.permute.xlu1 %1085 }
 0x133   : > { %v4132_v30 = vpop.permute.xlu0 %1007  ;;  %v1405_v45 = vsel %vm1398_vm8, %v1384_v37, %v1086_v29 }
 0x134   : > { %943 = vrot.lane.b32.xlu1 %v3190_v26, %s3519_s15  ;;  %v1385_v54 = vsel %vm1377_vm7, %v1364_v58, %v4132_v30 }
 0x135   : > { %705 = vrot.lane.b32.xlu0 %v3189_v15, %s3517_s30 }
 0x136   : > { %v4137_v35 = vpop.permute.xlu1 %849 }
 0x137   : > { %v4139_v20 = vpop.permute.xlu0 %771 }
 0x138   : > { %1259 = vrot.lane.b32.xlu1 %v3210_v33, %s3523_s20 }
 0x139   : > { %1021 = vrot.lane.b32.xlu0 %v3209_v24, %s3520_s16 }
 0x13a   : > { %v1166_v36 = vpop.permute.xlu1 %1165 }
 0x13b   : > { %v4143_v25 = vpop.permute.xlu0 %1087  ;;  %v1426_v47 = vsel %vm1419_vm9, %v1405_v45, %v1166_v36 }
 0x13c   : > { %785 = vrot.lane.b32.xlu1 %v3209_v24, %s3516_s28  ;;  %v1406_v2 = vsel %vm1398_vm8, %v1385_v54, %v4143_v25  ;;  %v1344_v24 = vsel %vm1335_vm5, %v1323_v22, %v4137_v35  ;;  %v1303_v25 = vsel %vm1293_vm3, %v3877_v0, %v4128_v28  ;;  %v3176_v54 = vld [vmem:[%s3761_s27 + $0x110] sm:$0xff] }
 0x13d   : > { %707 = vrot.lane.b32.xlu0 %v3190_v26, %s3517_s30  ;;  %v1324_v39 = vsel %vm1314_vm4, %v1303_v25, %v4139_v20 }
 0x13e   : > { %v4157_v43 = vpop.permute.xlu1 %929 }
 0x13f   : > { %v4159_v44 = vpop.permute.xlu0 %851  ;;  %v1365_v30 = vsel %vm1356_vm6, %v1344_v24, %v4157_v43 }
 0x140   : > { %1101 = vrot.lane.b32.xlu1 %v4153_v34, %s3521_s21  ;;  %v1345_v43 = vsel %vm1335_vm5, %v1324_v39, %v4159_v44 }
 0x141   : > { %1023 = vrot.lane.b32.xlu0 %v3210_v33, %s3520_s16 }
 0x142   : > { %v1246_v48 = vpop.permute.xlu1 %1245 }
 0x143   : > { %v1168_v51 = vpop.permute.xlu0 %1167  ;;  %v1447_v52 = vsel %vm1440_vm10, %v1426_v47, %v1246_v48 }
 0x144   : > { %865 = vrot.lane.b32.xlu1 %v4153_v34, %s3518_s13  ;;  %3332 = vmatprep.mubr.msk.f32.mxu0 %vm1466_vm11, %v1447_v52  ;;  %v1427_v42 = vsel %vm1419_vm9, %v1406_v2, %v1168_v51  ;;  %v3213_v51 = vld [vmem:[%s3761_s27 + $0xf2] sm:$0xff]  ;;  %v3175_v2 = vld [vmem:[%s3761_s27 + $0x108] sm:$0xff] }
 0x145   : > { %787 = vrot.lane.b32.xlu0 %v3210_v33, %s3516_s28  ;;  %v3194_v52 = vld [vmem:[%s3761_s27 + $0xf9] sm:$0xff] }
 0x146   : > { %v4184_v1 = vpop.permute.xlu1 %931 }
 0x147   : > { %v4186_v5 = vpop.permute.xlu0 %693  ;;  %v1366_v0 = vsel %vm1356_vm6, %v1345_v43, %v4184_v1  ;;  %v3154_v1 = vld [vmem:[%s3761_s27 + $0xfa] sm:$0xff] }
 0x148   : > { %1181 = vrot.lane.b32.xlu1 %v3191_v59, %s3522_s17 }
 0x149   : > { %1103 = vrot.lane.b32.xlu0 %v4180_v60, %s3521_s21 }
 0x14a   : > { %v1248_v53 = vpop.permute.xlu1 %1247 }
 0x14b   : > { %v1010_v3 = vpop.permute.xlu0 %1009  ;;  %v1448_v7 = vsel %vm1440_vm10, %v1427_v42, %v1248_v53 }
 0x14c   : > { %945 = vrot.lane.b32.xlu1 %v3191_v59, %s3519_s15  ;;  %3333 = vmatmul.mubr.msk.f32.gmra.mrb[6].mxu0 %vm1466_vm11, %v1448_v7  ;;  %v1386_v62 = vsel %vm1377_vm7, %v1365_v30, %v1010_v3  ;;  %v1304_v3 = vsel %vm1293_vm3, %v3897_v6, %v4186_v5  ;;  %v3216_v5 = vld [vmem:[%s3761_s27 + $0x112] sm:$0xff] }
 0x14d   : > { %867 = vrot.lane.b32.xlu0 %v4180_v60, %s3518_s13 }
 0x14e   : > { %v4234_v11 = vpop.permute.xlu1 %773 }
 0x14f   : > { %v4236_v14 = vpop.permute.xlu0 %695  ;;  %v1325_v7 = vsel %vm1314_vm4, %v1304_v3, %v4234_v11 }
 0x150   : > { %1261 = vrot.lane.b32.xlu1 %v3211_v8, %s3523_s20  ;;  %v1305_v24 = vsel %vm1293_vm3, %v3911_v12, %v4236_v14 }
 0x151   : > { %1183 = vrot.lane.b32.xlu0 %v3192_v9, %s3522_s17 }
 0x152   : > { %v1090_v15 = vpop.permute.xlu1 %1089 }
 0x153   : > { %v1012_v18 = vpop.permute.xlu0 %1011  ;;  %v1407_v50 = vsel %vm1398_vm8, %v1386_v62, %v1090_v15 }
 0x154   : > { %947 = vrot.lane.b32.xlu1 %v3192_v9, %s3519_s15  ;;  %v1387_v28 = vsel %vm1377_vm7, %v1366_v0, %v1012_v18 }
 0x155   : > { %709 = vrot.lane.b32.xlu0 %v3191_v59, %s3517_s30 }
 0x156   : > { %v4243_v4 = vpop.permute.xlu1 %853 }
 0x157   : > { %v4245_v38 = vpop.permute.xlu0 %775  ;;  %v1346_v15 = vsel %vm1335_vm5, %v1325_v7, %v4243_v4 }
 0x158   : > { %1263 = vrot.lane.b32.xlu1 %v3212_v21, %s3523_s20 }
 0x159   : > { %1025 = vrot.lane.b32.xlu0 %v3211_v8, %s3520_s16 }
 0x15a   : > { %v1170_v10 = vpop.permute.xlu1 %1169 }
 0x15b   : > { %v1092_v13 = vpop.permute.xlu0 %1091  ;;  %v1428_v27 = vsel %vm1419_vm9, %v1407_v50, %v1170_v10 }
 0x15c   : > { %789 = vrot.lane.b32.xlu1 %v3211_v8, %s3516_s28  ;;  %v1408_v20 = vsel %vm1398_vm8, %v1387_v28, %v1092_v13  ;;  %v3196_v8 = vld [vmem:[%s3761_s27 + $0x111] sm:$0xff] }
 0x15d   : > { %711 = vrot.lane.b32.xlu0 %v3192_v9, %s3517_s30  ;;  %v3195_v9 = vld [vmem:[%s3761_s27 + $0x109] sm:$0xff] }
 0x15e   : > { %v934_v26 = vpop.permute.xlu1 %933 }
 0x15f   : > { %v4259_v29 = vpop.permute.xlu0 %855  ;;  %v1367_v10 = vsel %vm1356_vm6, %v1346_v15, %v934_v26  ;;  %v1326_v26 = vsel %vm1314_vm4, %v1305_v24, %v4245_v38 }
 0x160   : > { %1105 = vrot.lane.b32.xlu1 %v3173_v23, %s3521_s21  ;;  %v1347_v30 = vsel %vm1335_vm5, %v1326_v26, %v4259_v29 }
 0x161   : > { %1027 = vrot.lane.b32.xlu0 %v3212_v21, %s3520_s16 }
 0x162   : > { %v1250_v33 = vpop.permute.xlu1 %1249 }
 0x163   : > { %v1172_v35 = vpop.permute.xlu0 %1171  ;;  %v1449_v36 = vsel %vm1440_vm10, %v1428_v27, %v1250_v33 }
 0x164   : > { %869 = vrot.lane.b32.xlu1 %v3173_v23, %s3518_s13  ;;  %3335 = vmatprep.mubr.msk.f32.mxu0 %vm1466_vm11, %v1449_v36  ;;  %v1429_v45 = vsel %vm1419_vm9, %v1408_v20, %v1172_v35 }
 0x165   : > { %791 = vrot.lane.b32.xlu0 %v3212_v21, %s3516_s28 }
 0x166   : > { %v936_v56 = vpop.permute.xlu1 %935 }
 0x167   : > { %v4281_v37 = vpop.permute.xlu0 %697  ;;  %v1368_v27 = vsel %vm1356_vm6, %v1347_v30, %v936_v56 }
 0x168   : > { %1185 = vrot.lane.b32.xlu1 %v3193_v40, %s3522_s17  ;;  %v1306_v28 = vsel %vm1293_vm3, %v3944_v31, %v4281_v37 }
 0x169   : > { %1107 = vrot.lane.b32.xlu0 %v3174_v41, %s3521_s21 }
 0x16a   : > { %v1252_v47 = vpop.permute.xlu1 %1251 }
 0x16b   : > { %v1014_v44 = vpop.permute.xlu0 %1013  ;;  %v1450_v48 = vsel %vm1440_vm10, %v1429_v45, %v1252_v47 }
 0x16c   : > { %949 = vrot.lane.b32.xlu1 %v3193_v40, %s3519_s15  ;;  %3336 = vmatmul.mubr.msk.f32.gmra.mrb[8].mxu0 %vm1466_vm11, %v1450_v48  ;;  %v1388_v13 = vsel %vm1377_vm7, %v1367_v10, %v1014_v44 }
 0x16d   : > { %871 = vrot.lane.b32.xlu0 %v3174_v41, %s3518_s13 }
 0x16e   : > { %v4296_v55 = vpop.permute.xlu1 %777 }
 0x16f   : > { %v4298_v57 = vpop.permute.xlu0 %699  ;;  %v1327_v20 = vsel %vm1314_vm4, %v1306_v28, %v4296_v55 }
 0x170   : > { %1265 = vrot.lane.b32.xlu1 %v3213_v51, %s3523_s20  ;;  %v1307_v31 = vsel %vm1293_vm3, %v3969_v49, %v4298_v57 }
 0x171   : > { %1187 = vrot.lane.b32.xlu0 %v3194_v52, %s3522_s17 }
 0x172   : > { %v1094_v59 = vpop.permute.xlu1 %1093 }
 0x173   : > { %v1016_v63 = vpop.permute.xlu0 %1015  ;;  %v1409_v6 = vsel %vm1398_vm8, %v1388_v13, %v1094_v59 }
 0x174   : > { %1029 = vrot.lane.b32.xlu1 %v3213_v51, %s3520_s16  ;;  %v1389_v33 = vsel %vm1377_vm7, %v1368_v27, %v1016_v63 }
 0x175   : > { %951 = vrot.lane.b32.xlu0 %v3194_v52, %s3519_s15 }
 0x176   : > { %v858_v58 = vpop.permute.xlu1 %857 }
 0x177   : > { %v4305_v46 = vpop.permute.xlu0 %779  ;;  %v1348_v45 = vsel %vm1335_vm5, %v1327_v20, %v858_v58 }
 0x178   : > { %1031 = vrot.lane.b32.xlu1 %v3154_v1, %s3520_s16  ;;  %v1328_v37 = vsel %vm1314_vm4, %v1307_v31, %v4305_v46 }
 0x179   : > { %1267 = vrot.lane.b32.xlu0 %v3154_v1, %s3523_s20 }
 0x17a   : > { %v1174_v42 = vpop.permute.xlu1 %1173 }
 0x17b   : > { %v1096_v53 = vpop.permute.xlu0 %1095  ;;  %v1430_v11 = vsel %vm1419_vm9, %v1409_v6, %v1174_v42 }
 0x17c   : > { %1111 = vrot.lane.b32.xlu1 %v3176_v54, %s3521_s21  ;;  %v1410_v12 = vsel %vm1398_vm8, %v1389_v33, %v1096_v53 }
 0x17d   : > { %1109 = vrot.lane.b32.xlu0 %v3175_v2, %s3521_s21 }
 0x17e   : > { %v938_v18 = vpop.permute.xlu1 %937 }
 0x17f   : > { %v860_v21 = vpop.permute.xlu0 %859  ;;  %v1369_v48 = vsel %vm1356_vm6, %v1348_v45, %v938_v18 }
 0x180   : > { %1191 = vrot.lane.b32.xlu1 %v3196_v8, %s3522_s17  ;;  %v1349_v55 = vsel %vm1335_vm5, %v1328_v37, %v860_v21 }
 0x181   : > { %1189 = vrot.lane.b32.xlu0 %v3195_v9, %s3522_s17 }
 0x182   : > { %v1254_v22 = vpop.permute.xlu1 %1253 }
 0x183   : > { %v1176_v23 = vpop.permute.xlu0 %1175  ;;  %v1451_v4 = vsel %vm1440_vm10, %v1430_v11, %v1254_v22 }
 0x184   : > { %1271 = vrot.lane.b32.xlu1 %v3216_v5, %s3523_s20  ;;  %3338 = vmatprep.mubr.msk.f32.mxu0 %vm1466_vm11, %v1451_v4  ;;  %v1431_v14 = vsel %vm1419_vm9, %v1410_v12, %v1176_v23  ;;  %v4386_v4 = vld [vmem:[%s5097_s2] ss:$0 sm:$0xff]  ;;  %v4399_v12 = vstv %s3612_s14 }
 0x185   : > { %1269 = vrot.lane.b32.xlu0 %v3215_v19, %s3523_s20 }
 0x186   : > { %v940_v62 = vpop.permute.xlu1 %939 }
 0x187   : > { %v702_v50 = vpop.permute.xlu0 %701  ;;  %v1370_v42 = vsel %vm1356_vm6, %v1349_v55, %v940_v62 }
 0x188   : > { %v1308_v5 = vsel %vm1293_vm3, %v4012_v17, %v702_v50  ;;  %v4393_v17 = vld [vmem:[%s5098_s3] ss:$0 sm:$0xff] }
 0x18a   : > { %v1256_v35 = vpop.permute.xlu1 %1255 }
 0x18b   : > { %v1018_v36 = vpop.permute.xlu0 %1017  ;;  %v1452_v25 = vsel %vm1440_vm10, %v1431_v14, %v1256_v35 }
 0x18c   : > { %3339 = vmatmul.mubr.msk.f32.gmra.mrb[10].mxu0 %vm1466_vm11, %v1452_v25  ;;  %v1390_v51 = vsel %vm1377_vm7, %v1369_v48, %v1018_v36 }
 0x18e   : > { %v782_v38 = vpop.permute.xlu1 %781 }
 0x18f   : > { %v704_v39 = vpop.permute.xlu0 %703  ;;  %v1329_v19 = vsel %vm1314_vm4, %v1308_v5, %v782_v38 }
 0x192   : > { %v1098_v40 = vpop.permute.xlu1 %1097 }
 0x193   : > { %v1020_v29 = vpop.permute.xlu0 %1019  ;;  %v1411_v52 = vsel %vm1398_vm8, %v1390_v51, %v1098_v40  ;;  %v1309_v40 = vsel %vm1293_vm3, %v4038_v32, %v704_v39 }
 0x194   : > { %v1391_v53 = vsel %vm1377_vm7, %v1370_v42, %v1020_v29 }
 0x196   : > { %v862_v41 = vpop.permute.xlu1 %861 }
 0x197   : > { %v784_v43 = vpop.permute.xlu0 %783  ;;  %v1350_v11 = vsel %vm1335_vm5, %v1329_v19, %v862_v41 }
 0x198   : > { %v1330_v41 = vsel %vm1314_vm4, %v1309_v40, %v784_v43 }
 0x19a   : > { %v1178_v0 = vpop.permute.xlu1 %1177 }
 0x19b   : > { %v1100_v56 = vpop.permute.xlu0 %1099  ;;  %v1432_v59 = vsel %vm1419_vm9, %v1411_v52, %v1178_v0 }
 0x19c   : > { %v1412_v3 = vsel %vm1398_vm8, %v1391_v53, %v1100_v56 }
 0x19e   : > { %v942_v47 = vpop.permute.xlu1 %941 }
 0x19f   : > { %v864_v44 = vpop.permute.xlu0 %863  ;;  %v1371_v24 = vsel %vm1356_vm6, %v1350_v11, %v942_v47 }
 0x1a0   : > { %v1351_v56 = vsel %vm1335_vm5, %v1330_v41, %v864_v44 }
 0x1a2   : > { %v1258_v63 = vpop.permute.xlu1 %1257 }
 0x1a3   : > { %v1180_v1 = vpop.permute.xlu0 %1179  ;;  %v1453_v54 = vsel %vm1440_vm10, %v1432_v59, %v1258_v63 }
 0x1a4   : > { %3341 = vmatprep.mubr.msk.f32.mxu0 %vm1466_vm11, %v1453_v54  ;;  %v1433_v7 = vsel %vm1419_vm9, %v1412_v3, %v1180_v1 }
 0x1a6   : > { %v944_v58 = vpop.permute.xlu1 %943 }
 0x1a7   : > { %v4365_v2 = vpop.permute.xlu0 %705  ;;  %v1372_v47 = vsel %vm1356_vm6, %v1351_v56, %v944_v58 }
 0x1a8   : > { %v1310_v53 = vsel %vm1293_vm3, %v4081_v61, %v4365_v2 }
 0x1aa   : > { %v1260_v8 = vpop.permute.xlu1 %1259 }
 0x1ab   : > { %v1022_v49 = vpop.permute.xlu0 %1021  ;;  %v1454_v57 = vsel %vm1440_vm10, %v1433_v7, %v1260_v8 }
 0x1ac   : > { %3342 = vmatmul.mubr.msk.f32.gmra.mrb[12].mxu0 %vm1466_vm11, %v1454_v57  ;;  %v1392_v26 = vsel %vm1377_vm7, %v1371_v24, %v1022_v49 }
 0x1ae   : > { %v786_v46 = vpop.permute.xlu1 %785 }
 0x1af   : > { %v4373_v9 = vpop.permute.xlu0 %707  ;;  %v1331_v3 = vsel %vm1314_vm4, %v1310_v53, %v786_v46 }
 0x1b2   : > { %v1102_v15 = vpop.permute.xlu1 %1101 }
 0x1b3   : > { %v1024_v18 = vpop.permute.xlu0 %1023  ;;  %v1413_v62 = vsel %vm1398_vm8, %v1392_v26, %v1102_v15 }
 0x1b4   : > { %v1393_v39 = vsel %vm1377_vm7, %v1372_v47, %v1024_v18 }
 0x1b6   : > { %v866_v21 = vpop.permute.xlu1 %865 }
 0x1b7   : > { %v4375_v10 = vpop.permute.xlu0 %787  ;;  %v1352_v7 = vsel %vm1335_vm5, %v1331_v3, %v866_v21 }
 0x1ba   : > { %v1182_v13 = vpop.permute.xlu1 %1181 }
 0x1bb   : > { %v1104_v6 = vpop.permute.xlu0 %1103  ;;  %v1434_v33 = vsel %vm1419_vm9, %v1413_v62, %v1182_v13 }
 0x1bc   : > { %v1414_v43 = vsel %vm1398_vm8, %v1393_v39, %v1104_v6 }
 0x1be   : > { %v946_v22 = vpop.permute.xlu1 %945 }
 0x1bf   : > { %v4381_v23 = vpop.permute.xlu0 %867  ;;  %v3325_v30 = vpop.f32.mrb[0].mxu0  ;;  %v1373_v57 = vsel %vm1356_vm6, %v1352_v7, %v946_v22  ;;  %v1311_v22 = vsel %vm1293_vm3, %v4106_v16, %v4373_v9 }
 0x1c0   : > { %v1704_v50 = vmul.f32 %v3325_v30, %v4386_v4  ;;  %v1597_v27 = vpop.f32.mrb[1].mxu0  ;;  %v1332_v26 = vsel %vm1314_vm4, %v1311_v22, %v4375_v10 }
 0x1c1   : > { %v1703_v14 = vmul.f32 %v4386_v4, %v1597_v27  ;;  %v1353_v62 = vsel %vm1335_vm5, %v1332_v26, %v4381_v23 }
 0x1c2   : > { %v1262_v35 = vpop.permute.xlu1 %1261  ;;  %v1731_v25 = vadd.f32 %v4393_v17, %v1704_v50 }
 0x1c3   : > { %v1184_v36 = vpop.permute.xlu0 %1183  ;;  %v1455_v38 = vsel %vm1440_vm10, %v1434_v33, %v1262_v35  ;;  %v1730_v29 = vadd.f32 %v4393_v17, %v1703_v14 }
 0x1c4   : > { %3344 = vmatprep.mubr.msk.f32.mxu0 %vm1466_vm11, %v1455_v38  ;;  %vm1751_vm13 = vcmp.gt.f32.partialorder %v1731_v25, 0.0  ;;  %v1772_v0 = vmul.f32 %v4399_v12, %v1731_v25  ;;  %v1435_v44 = vsel %vm1419_vm9, %v1414_v43, %v1184_v36 }
 0x1c5   : > { %vm1750_vm14 = vcmp.gt.f32.partialorder %v1730_v29, 0.0  ;;  %v1771_v28 = vmul.f32 %v4399_v12, %v1730_v29 }
 0x1c6   : > { %v948_v20 = vpop.permute.xlu1 %947  ;;  %v1792_v32 = vsel %vm1751_vm13, %v1731_v25, %v1772_v0 }
 0x1c7   : > { %v4412_v45 = vpop.permute.xlu0 %709  ;;  %1843 = vst.msk [vmem:[#allocation3 + $0x9] sm:$0xff] %vm1314_vm4, %v1792_v32  ;;  %v1791_v48 = vsel %vm1750_vm14, %v1730_v29, %v1771_v28  ;;  %v1374_v16 = vsel %vm1356_vm6, %v1353_v62, %v948_v20 }
 0x1c8   : > { %1842 = vst.msk [vmem:[#allocation3 + $0x1] sm:$0xff] %vm1314_vm4, %v1791_v48  ;;  %v1312_v41 = vsel %vm1293_vm3, %v4153_v34, %v4412_v45 }
 0x1ca   : > { %v1264_v51 = vpop.permute.xlu1 %1263 }
 0x1cb   : > { %v1026_v52 = vpop.permute.xlu0 %1025  ;;  %v1456_v59 = vsel %vm1440_vm10, %v1435_v44, %v1264_v51 }
 0x1cc   : > { %3345 = vmatmul.mubr.msk.f32.gmra.mrb[14].mxu0 %vm1466_vm11, %v1456_v59  ;;  %v1394_v15 = vsel %vm1377_vm7, %v1373_v57, %v1026_v52 }
 0x1ce   : > { %v790_v63 = vpop.permute.xlu1 %789 }
 0x1cf   : > { %v712_v1 = vpop.permute.xlu0 %711  ;;  %v1333_v56 = vsel %vm1314_vm4, %v1312_v41, %v790_v63 }
 0x1d0   : > { %v1313_v0 = vsel %vm1293_vm3, %v4180_v60, %v712_v1 }
 0x1d2   : > { %v1106_v54 = vpop.permute.xlu1 %1105 }
 0x1d3   : > { %v1028_v31 = vpop.permute.xlu0 %1027  ;;  %v1415_v13 = vsel %vm1398_vm8, %v1394_v15, %v1106_v54 }
 0x1d4   : > { %v1395_v14 = vsel %vm1377_vm7, %v1374_v16, %v1028_v31 }
 0x1d6   : > { %v870_v37 = vpop.permute.xlu1 %869 }
 0x1d7   : > { %v792_v55 = vpop.permute.xlu0 %791  ;;  %v1354_v20 = vsel %vm1335_vm5, %v1333_v56, %v870_v37 }
 0x1d8   : > { %v1334_v28 = vsel %vm1314_vm4, %v1313_v0, %v792_v55 }
 0x1da   : > { %v1186_v58 = vpop.permute.xlu1 %1185 }
 0x1db   : > { %v1108_v42 = vpop.permute.xlu0 %1107  ;;  %v1436_v19 = vsel %vm1419_vm9, %v1415_v13, %v1186_v58 }
 0x1dc   : > { %v1416_v10 = vsel %vm1398_vm8, %v1395_v14, %v1108_v42 }
 0x1de   : > { %v950_v8 = vpop.permute.xlu1 %949 }
 0x1df   : > { %v872_v49 = vpop.permute.xlu0 %871  ;;  %v3328_v18 = vpop.f32.mrb[2].mxu0  ;;  %v1375_v48 = vsel %vm1356_vm6, %v1354_v20, %v950_v8 }
 0x1e0   : > { %v1706_v6 = vmul.f32 %v3328_v18, %v4386_v4  ;;  %v1607_v5 = vpop.f32.mrb[3].mxu0  ;;  %v1355_v47 = vsel %vm1335_vm5, %v1334_v28, %v872_v49 }
 0x1e1   : > { %v1705_v61 = vmul.f32 %v4386_v4, %v1607_v5 }
 0x1e2   : > { %v1266_v2 = vpop.permute.xlu1 %1265  ;;  %v1733_v21 = vadd.f32 %v4393_v17, %v1706_v6 }
 0x1e3   : > { %v1188_v46 = vpop.permute.xlu0 %1187  ;;  %v1457_v11 = vsel %vm1440_vm10, %v1436_v19, %v1266_v2  ;;  %v1732_v24 = vadd.f32 %v4393_v17, %v1705_v61 }
 0x1e4   : > { %3347 = vmatprep.mubr.msk.f32.mxu0 %vm1466_vm11, %v1457_v11  ;;  %vm1753_vm15 = vcmp.gt.f32.partialorder %v1733_v21, 0.0  ;;  %v1774_v30 = vmul.f32 %v4399_v12, %v1733_v21  ;;  %v1437_v36 = vsel %vm1419_vm9, %v1416_v10, %v1188_v46 }
 0x1e5   : > { %vm1752_vm0 = vcmp.gt.f32.partialorder %v1732_v24, 0.0  ;;  %v1773_v50 = vmul.f32 %v4399_v12, %v1732_v24 }
 0x1e6   : > { %v1030_v27 = vpop.permute.xlu1 %1029  ;;  %v1794_v9 = vsel %vm1753_vm15, %v1733_v21, %v1774_v30 }
 0x1e7   : > { %v952_v33 = vpop.permute.xlu0 %951  ;;  %1845 = vst.msk [vmem:[#allocation3 + $0x21] sm:$0xff] %vm1314_vm4, %v1794_v9  ;;  %v1793_v35 = vsel %vm1752_vm0, %v1732_v24, %v1773_v50  ;;  %v1396_v44 = vsel %vm1377_vm7, %v1375_v48, %v1030_v27 }
 0x1e8   : > { %1844 = vst.msk [vmem:[#allocation3 + $0x19] sm:$0xff] %vm1314_vm4, %v1793_v35  ;;  %v1376_v43 = vsel %vm1356_vm6, %v1355_v47, %v952_v33 }
 0x1ea   : > { %v1032_v23 = vpop.permute.xlu1 %1031 }
 0x1eb   : > { %v1268_v25 = vpop.permute.xlu0 %1267  ;;  %v1397_v34 = vsel %vm1377_vm7, %v1376_v43, %v1032_v23 }
 0x1ec   : > { %v1458_v38 = vsel %vm1440_vm10, %v1437_v36, %v1268_v25 }
 0x1ed   : > { %3348 = vmatmul.mubr.msk.f32.gmra.mrb[16].mxu0 %vm1466_vm11, %v1458_v38 }
 0x1ee   : > { %v1112_v40 = vpop.permute.xlu1 %1111 }
 0x1ef   : > { %v1110_v29 = vpop.permute.xlu0 %1109  ;;  %v1418_v60 = vsel %vm1398_vm8, %v1397_v34, %v1112_v40 }
 0x1f0   : > { %v1417_v45 = vsel %vm1398_vm8, %v1396_v44, %v1110_v29 }
 0x1f2   : > { %v1192_v32 = vpop.permute.xlu1 %1191 }
 0x1f3   : > { %v1190_v39 = vpop.permute.xlu0 %1189  ;;  %v1439_v51 = vsel %vm1419_vm9, %v1418_v60, %v1192_v32 }
 0x1f4   : > { %v1438_v52 = vsel %vm1419_vm9, %v1417_v45, %v1190_v39 }
 0x1f6   : > { %v1272_v59 = vpop.permute.xlu1 %1271 }
 0x1f7   : > { %v1270_v63 = vpop.permute.xlu0 %1269  ;;  %v1460_v1 = vsel %vm1440_vm10, %v1439_v51, %v1272_v59 }
 0x1f8   : > { %v1459_v54 = vsel %vm1440_vm10, %v1438_v52, %v1270_v63 }
 0x1f9   : > { %3350 = vmatprep.mubr.msk.f32.mxu0 %vm1466_vm11, %v1459_v54 }
 0x1fa   : > { %3351 = vmatmul.mubr.msk.f32.gmra.mrb[18].mxu0 %vm1466_vm11, %v1460_v1 }
 0x1ff   : > { %v3331_v31 = vpop.f32.mrb[4].mxu0 }
 0x200   : > { %v1708_v37 = vmul.f32 %v3331_v31, %v4386_v4  ;;  %v1617_v55 = vpop.f32.mrb[5].mxu0 }
 0x201   : > { %v1707_v58 = vmul.f32 %v4386_v4, %v1617_v55 }
 0x202   : > { %v1735_v42 = vadd.f32 %v4393_v17, %v1708_v37 }
 0x203   : > { %v1734_v53 = vadd.f32 %v4393_v17, %v1707_v58 }
 0x204   : > { %vm1755_vm1 = vcmp.gt.f32.partialorder %v1735_v42, 0.0  ;;  %v1776_v3 = vmul.f32 %v4399_v12, %v1735_v42 }
 0x205   : > { %vm1754_vm2 = vcmp.gt.f32.partialorder %v1734_v53, 0.0  ;;  %v1775_v7 = vmul.f32 %v4399_v12, %v1734_v53 }
 0x206   : > { %v1796_v8 = vsel %vm1755_vm1, %v1735_v42, %v1776_v3 }
 0x207   : > { %1847 = vst.msk [vmem:[#allocation3 + $0x39] sm:$0xff] %vm1314_vm4, %v1796_v8  ;;  %v1795_v49 = vsel %vm1754_vm2, %v1734_v53, %v1775_v7 }
 0x208   : > { %1846 = vst.msk [vmem:[#allocation3 + $0x31] sm:$0xff] %vm1314_vm4, %v1795_v49 }
 0x21f   : > { %v3334_v57 = vpop.f32.mrb[6].mxu0 }
 0x220   : > { %v1710_v15 = vmul.f32 %v3334_v57, %v4386_v4  ;;  %v1627_v18 = vpop.f32.mrb[7].mxu0 }
 0x221   : > { %v1709_v13 = vmul.f32 %v4386_v4, %v1627_v18 }
 0x222   : > { %v1737_v6 = vadd.f32 %v4393_v17, %v1710_v15 }
 0x223   : > { %v1736_v5 = vadd.f32 %v4393_v17, %v1709_v13 }
 0x224   : > { %vm1757_vm5 = vcmp.gt.f32.partialorder %v1737_v6, 0.0  ;;  %v1778_v19 = vmul.f32 %v4399_v12, %v1737_v6 }
 0x225   : > { %vm1756_vm7 = vcmp.gt.f32.partialorder %v1736_v5, 0.0  ;;  %v1777_v61 = vmul.f32 %v4399_v12, %v1736_v5 }
 0x226   : > { %v1798_v2 = vsel %vm1757_vm5, %v1737_v6, %v1778_v19 }
 0x227   : > { %1849 = vst.msk [vmem:[#allocation3 + $0x51] sm:$0xff] %vm1314_vm4, %v1798_v2  ;;  %v1797_v46 = vsel %vm1756_vm7, %v1736_v5, %v1777_v61 }
 0x228   : > { %1848 = vst.msk [vmem:[#allocation3 + $0x49] sm:$0xff] %vm1314_vm4, %v1797_v46 }
 0x23f   : > { %v3337_v21 = vpop.f32.mrb[8].mxu0 }
 0x240   : > { %v1712_v11 = vmul.f32 %v3337_v21, %v4386_v4  ;;  %v1637_v22 = vpop.f32.mrb[9].mxu0 }
 0x241   : > { %v1711_v24 = vmul.f32 %v4386_v4, %v1637_v22 }
 0x242   : > { %v1739_v26 = vadd.f32 %v4393_v17, %v1712_v11 }
 0x243   : > { %v1738_v30 = vadd.f32 %v4393_v17, %v1711_v24 }
 0x244   : > { %vm1759_vm9 = vcmp.gt.f32.partialorder %v1739_v26, 0.0  ;;  %v1780_v62 = vmul.f32 %v4399_v12, %v1739_v26 }
 0x245   : > { %vm1758_vm11 = vcmp.gt.f32.partialorder %v1738_v30, 0.0  ;;  %v1779_v50 = vmul.f32 %v4399_v12, %v1738_v30 }
 0x246   : > { %v1800_v27 = vsel %vm1759_vm9, %v1739_v26, %v1780_v62 }
 0x247   : > { %1851 = vst.msk [vmem:[#allocation3 + $0x69] sm:$0xff] %vm1314_vm4, %v1800_v27  ;;  %v1799_v33 = vsel %vm1758_vm11, %v1738_v30, %v1779_v50 }
 0x248   : > { %1850 = vst.msk [vmem:[#allocation3 + $0x61] sm:$0xff] %vm1314_vm4, %v1799_v33 }
 0x25f   : > { %v3340_v16 = vpop.f32.mrb[10].mxu0 }
 0x260   : > { %v1714_v9 = vmul.f32 %v3340_v16, %v4386_v4  ;;  %v1647_v14 = vpop.f32.mrb[11].mxu0 }
 0x261   : > { %v1713_v35 = vmul.f32 %v4386_v4, %v1647_v14 }
 0x262   : > { %v1741_v10 = vadd.f32 %v4393_v17, %v1714_v9 }
 0x263   : > { %v1740_v36 = vadd.f32 %v4393_v17, %v1713_v35 }
 0x264   : > { %vm1761_vm13 = vcmp.gt.f32.partialorder %v1741_v10, 0.0  ;;  %v1782_v23 = vmul.f32 %v4399_v12, %v1741_v10 }
 0x265   : > { %vm1760_vm14 = vcmp.gt.f32.partialorder %v1740_v36, 0.0  ;;  %v1781_v25 = vmul.f32 %v4399_v12, %v1740_v36 }
 0x266   : > { %v1802_v38 = vsel %vm1761_vm13, %v1741_v10, %v1782_v23 }
 0x267   : > { %1853 = vst.msk [vmem:[#allocation3 + $0x81] sm:$0xff] %vm1314_vm4, %v1802_v38  ;;  %v1801_v40 = vsel %vm1760_vm14, %v1740_v36, %v1781_v25 }
 0x268   : > { %1852 = vst.msk [vmem:[#allocation3 + $0x79] sm:$0xff] %vm1314_vm4, %v1801_v40 }
 0x27f   : > { %v3343_v29 = vpop.f32.mrb[12].mxu0 }
 0x280   : > { %v1716_v41 = vmul.f32 %v3343_v29, %v4386_v4  ;;  %v1657_v0 = vpop.f32.mrb[13].mxu0 }
 0x281   : > { %v1715_v56 = vmul.f32 %v4386_v4, %v1657_v0 }
 0x282   : > { %v1743_v28 = vadd.f32 %v4393_v17, %v1716_v41 }
 0x283   : > { %v1742_v20 = vadd.f32 %v4393_v17, %v1715_v56 }
 0x284   : > { %vm1763_vm15 = vcmp.gt.f32.partialorder %v1743_v28, 0.0  ;;  %v1784_v47 = vmul.f32 %v4399_v12, %v1743_v28 }
 0x285   : > { %vm1762_vm0 = vcmp.gt.f32.partialorder %v1742_v20, 0.0  ;;  %v1783_v32 = vmul.f32 %v4399_v12, %v1742_v20 }
 0x286   : > { %v1804_v39 = vsel %vm1763_vm15, %v1743_v28, %v1784_v47 }
 0x287   : > { %1855 = vst.msk [vmem:[#allocation3 + $0x99] sm:$0xff] %vm1314_vm4, %v1804_v39  ;;  %v1803_v48 = vsel %vm1762_vm0, %v1742_v20, %v1783_v32 }
 0x288   : > { %1854 = vst.msk [vmem:[#allocation3 + $0x91] sm:$0xff] %vm1314_vm4, %v1803_v48 }
 0x29f   : > { %v3346_v43 = vpop.f32.mrb[14].mxu0 }
 0x2a0   : > { %v1718_v44 = vmul.f32 %v3346_v43, %v4386_v4  ;;  %v1667_v34 = vpop.f32.mrb[15].mxu0 }
 0x2a1   : > { %v1717_v60 = vmul.f32 %v4386_v4, %v1667_v34 }
 0x2a2   : > { %v1745_v45 = vadd.f32 %v4393_v17, %v1718_v44 }
 0x2a3   : > { %v1744_v51 = vadd.f32 %v4393_v17, %v1717_v60 }
 0x2a4   : > { %vm1765_vm1 = vcmp.gt.f32.partialorder %v1745_v45, 0.0  ;;  %v1786_v52 = vmul.f32 %v4399_v12, %v1745_v45 }
 0x2a5   : > { %vm1764_vm2 = vcmp.gt.f32.partialorder %v1744_v51, 0.0  ;;  %v1785_v59 = vmul.f32 %v4399_v12, %v1744_v51 }
 0x2a6   : > { %v1806_v63 = vsel %vm1765_vm1, %v1745_v45, %v1786_v52 }
 0x2a7   : > { %1857 = vst.msk [vmem:[#allocation3 + $0xb1] sm:$0xff] %vm1314_vm4, %v1806_v63  ;;  %v1805_v1 = vsel %vm1764_vm2, %v1744_v51, %v1785_v59 }
 0x2a8   : > { %1856 = vst.msk [vmem:[#allocation3 + $0xa9] sm:$0xff] %vm1314_vm4, %v1805_v1 }
 0x2c0   : > { %v3349_v54 = vpop.f32.mrb[16].mxu0 }
 0x2c1   : > { %v1720_v31 = vmul.f32 %v3349_v54, %v4386_v4  ;;  %v1677_v37 = vpop.f32.mrb[17].mxu0 }
 0x2c2   : > { %v1719_v55 = vmul.f32 %v4386_v4, %v1677_v37 }
 0x2c3   : > { %v1747_v58 = vadd.f32 %v4393_v17, %v1720_v31 }
 0x2c4   : > { %v1746_v42 = vadd.f32 %v4393_v17, %v1719_v55 }
 0x2c5   : > { %vm1767_vm5 = vcmp.gt.f32.partialorder %v1747_v58, 0.0  ;;  %v1788_v53 = vmul.f32 %v4399_v12, %v1747_v58 }
 0x2c6   : > { %vm1766_vm7 = vcmp.gt.f32.partialorder %v1746_v42, 0.0  ;;  %v1787_v3 = vmul.f32 %v4399_v12, %v1746_v42 }
 0x2c7   : > { %v1808_v7 = vsel %vm1767_vm5, %v1747_v58, %v1788_v53 }
 0x2c8   : > { %1859 = vst.msk [vmem:[#allocation3 + $0xc9] sm:$0xff] %vm1314_vm4, %v1808_v7  ;;  %v1807_v8 = vsel %vm1766_vm7, %v1746_v42, %v1787_v3 }
 0x2c9   : > { %1858 = vst.msk [vmem:[#allocation3 + $0xc1] sm:$0xff] %vm1314_vm4, %v1807_v8 }
 0x2cd   : > { %v3352_v49 = vpop.f32.mrb[18].mxu0 }
 0x2ce   : > { %v1722_v57 = vmul.f32 %v3352_v49, %v4386_v4  ;;  %v1687_v15 = vpop.f32.mrb[19].mxu0 }
 0x2cf   : > { %v1721_v18 = vmul.f32 %v4386_v4, %v1687_v15  ;;  %v3525_v4 = vmov (!%p3090_p7), 0.0  }
 0x2d0   : > { %v1749_v13 = vadd.f32 %v4393_v17, %v1722_v57  ;;  %1864 = sbr.rel (%p3090_p7) target bundleno = 727 (0x2d7), region = 60  ;;  %1865 = vst.msk [vmem:[#allocation3] sm:$0xff] (!%p3090_p7), %vm1314_vm4, %v3525_v4  ;;  %1866 = vst.msk [vmem:[#allocation3 + $0x8] sm:$0xff] (!%p3090_p7), %vm1314_vm4, %v3525_v4 }
 0x2d1   : > { %v1748_v6 = vadd.f32 %v4393_v17, %v1721_v18  ;;  %1867 = vst.msk [vmem:[#allocation3 + $0x10] sm:$0x3] (!%p3090_p7), %vm1813_vm12, %v3525_v4 }
 0x2d2   : > { %vm1769_vm9 = vcmp.gt.f32.partialorder %v1749_v13, 0.0  ;;  %v1790_v5 = vmul.f32 %v4399_v12, %v1749_v13 }
 0x2d3   : > { %vm1768_vm11 = vcmp.gt.f32.partialorder %v1748_v6, 0.0  ;;  %v1789_v19 = vmul.f32 %v4399_v12, %v1748_v6 }
 0x2d4   : > { %v1810_v61 = vsel %vm1769_vm9, %v1749_v13, %v1790_v5 }
 0x2d5   : > { %1861 = vst.msk [vmem:[#allocation3 + $0xe1] sm:$0xff] %vm1314_vm4, %v1810_v61  ;;  %v1809_v2 = vsel %vm1768_vm11, %v1748_v6, %v1789_v19 }
 0x2d6   : > { %1860 = vst.msk [vmem:[#allocation3 + $0xd9] sm:$0xff] %vm1314_vm4, %v1809_v2 }
 0x2d7 PF: > { %p3241_p8 = scmp.ne.s32.totalorder %s3497_s29, 1 }
 0x2d8   : > { %v3526_v17 = vmov (!%p3241_p8), 0.0  }
 0x2d9   : > { %1871 = sbr.rel (%p3241_p8) target bundleno = 736 (0x2e0), region = 64  ;;  %1873 = vst.msk [vmem:[#allocation3 + $0xd8] sm:$0xff] (!%p3241_p8), %vm1314_vm4, %v3526_v17  ;;  %1874 = vst.msk [vmem:[#allocation3 + $0xe0] sm:$0xff] (!%p3241_p8), %vm1314_vm4, %v3526_v17 }
 0x2da   : > { %1875 = vst.msk [vmem:[#allocation3 + $0xe8] sm:$0x3] (!%p3241_p8), %vm1813_vm12, %v3526_v17 }
 0x2e0 PF: > { %v1908_v46 = vld [vmem:[#allocation3 + $0x2] sm:$0xff]  ;;  %v1909_v11 = vld [vmem:[#allocation3 + $0xa] sm:$0xff]  ;;  %v4554_v26 = vld [vmem:[#allocation3 + $0x18] sm:$0xff]  ;;  %s3527_s24 = smov 40   ;;  %s3528_s29 = smov 48   ;;  %vm2598_vm12 = vcmask 326656  }
 0x2e1   : > { %v1892_v21 = vld [vmem:[#allocation3 + $0x1] sm:$0xff]  ;;  %2102 = vrot.lane.b32.xlu1 %v1908_v46, %s3519_s15  ;;  %v1893_v22 = vld [vmem:[#allocation3 + $0x9] sm:$0xff]  ;;  %v1894_v30 = vld [vmem:[#allocation3 + $0x19] sm:$0xff]  ;;  %s3529_s17 = smov 56   ;;  %s3530_s27 = smov 64   ;;  %vm2615_vm13 = vcmask 392192  }
 0x2e2   : > { %2038 = vrot.lane.b32.xlu0 %v1892_v21, %s3516_s28  ;;  %v4552_v24 = vld [vmem:[#allocation3 + $0x20] sm:$0xff]  ;;  %v2667_v33 = vld [vmem:[%s5099_s4 + $0x8] sm:$0xff]  ;;  %v2668_v9 = vld [vmem:[%s5099_s4 + $0x10] sm:$0xff]  ;;  %vm2632_vm14 = vcmask 457728   ;;  %vm2649_vm15 = vcmask 523264   ;;  %vm2675_vm0 = vcmask 588800  }
 0x2e3   : > { %v1957_v62 = vld [vmem:[#allocation3 + $0x1a] sm:$0xff]  ;;  %v4578_v10 = vld [vmem:[#allocation3 + $0x30] sm:$0xff]  ;;  %v1958_v36 = vld [vmem:[#allocation3 + $0x22] sm:$0xff] }
 0x2e4   : > { %v1942_v50 = vld [vmem:[#allocation3 + $0x21] sm:$0xff]  ;;  %v2669_v14 = vld [vmem:[%s5099_s4 + $0x18] sm:$0xff]  ;;  %v2672_v40 = vld [vmem:[%s5099_s4 + $0x30] sm:$0xff] }
 0x2e5   : > { %2104 = vrot.lane.b32.xlu1 %v1909_v11, %s3519_s15  ;;  %v2666_v27 = vld [vmem:[%s5099_s4] sm:$0xff]  ;;  %v3407_v35 = vpack.c.bf16 %v2669_v14, %v2668_v9  ;;  %v2671_v25 = vld [vmem:[%s5099_s4 + $0x28] sm:$0xff]  ;;  %v2673_v29 = vld [vmem:[%s5099_s4 + $0x38] sm:$0xff] }
 0x2e6   : > { %2040 = vrot.lane.b32.xlu0 %v1893_v22, %s3516_s28  ;;  %v3403_v16 = vpack.c.bf16 %v2667_v33, %v2666_v27  ;;  %v2670_v23 = vld [vmem:[%s5099_s4 + $0x20] sm:$0xff]  ;;  %v1990_v41 = vld [vmem:[#allocation3 + $0x31] sm:$0xff]  ;;  %v3415_v56 = vpack.c.bf16 %v2673_v29, %v2672_v40  ;;  %v4617_v39 = vld [vmem:[#allocation3 + $0x48] sm:$0xff] }
 0x2e7   : > { %v3411_v38 = vpack.c.bf16 %v2671_v25, %v2670_v23  ;;  %v4598_v0 = vld [vmem:[#allocation3 + $0x38] sm:$0xff]  ;;  %v2674_v28 = vld [vmem:[%s5099_s4 + $0x40] sm:$0xff]  ;;  %v1992_v48 = vld [vmem:[#allocation3 + $0x49] sm:$0xff] }
 0x2e8   : > { %3404 = vmatprep.subr.bf16.mxu1 %v3403_v16  ;;  %v2006_v20 = vld [vmem:[#allocation3 + $0x32] sm:$0xff]  ;;  %v2007_v32 = vld [vmem:[#allocation3 + $0x3a] sm:$0xff]  ;;  %v2008_v44 = vld [vmem:[#allocation3 + $0x4a] sm:$0xff] }
 0x2e9   : > { %2168 = vrot.lane.b32.xlu1 %v4552_v24, %s3521_s21  ;;  %3406 = vmatpush3.bf16.msra.mxu1 %v3403_v16  ;;  %v1991_v47 = vld [vmem:[#allocation3 + $0x39] sm:$0xff]  ;;  %v4625_v43 = vld [vmem:[#allocation3 + $0x50] sm:$0xff]  ;;  %v1994_v51 = vld [vmem:[#allocation3 + $0x61] sm:$0xff] }
 0x2ea   : > { %2166 = vrot.lane.b32.xlu0 %v4554_v26, %s3521_s21  ;;  %3408 = vmatprep.subr.bf16.mxu1 %v3407_v35  ;;  %v1993_v34 = vld [vmem:[#allocation3 + $0x51] sm:$0xff]  ;;  %v4641_v45 = vld [vmem:[#allocation3 + $0x60] sm:$0xff]  ;;  %v4649_v52 = vld [vmem:[#allocation3 + $0x68] sm:$0xff] }
 0x2eb   : > { %v2009_v60 = vld [vmem:[#allocation3 + $0x52] sm:$0xff]  ;;  %v2010_v59 = vld [vmem:[#allocation3 + $0x62] sm:$0xff]  ;;  %v2011_v1 = vld [vmem:[#allocation3 + $0x6a] sm:$0xff] }
 0x2ec   : > { %v1995_v63 = vld [vmem:[#allocation3 + $0x69] sm:$0xff]  ;;  %v4665_v37 = vld [vmem:[#allocation3 + $0x78] sm:$0xff]  ;;  %v4677_v7 = vld [vmem:[#allocation3 + $0x80] sm:$0xff] }
 0x2ed   : > { %2042 = vrot.lane.b32.xlu1 %v1894_v30, %s3516_s28  ;;  %3410 = vmatpush3.bf16.msra.mxu1 %v3407_v35  ;;  %v1996_v3 = vld [vmem:[#allocation3 + $0x79] sm:$0xff]  ;;  %v1997_v13 = vld [vmem:[#allocation3 + $0x81] sm:$0xff] }
 0x2ee   : > { %2230 = vrot.lane.b32.xlu0 %v1894_v30, %s3523_s20  ;;  %3412 = vmatprep.subr.bf16.mxu1 %v3411_v38  ;;  %v2012_v18 = vld [vmem:[#allocation3 + $0x7a] sm:$0xff]  ;;  %v2013_v2 = vld [vmem:[#allocation3 + $0x82] sm:$0xff] }
 0x2ef   : > { %v1876_v46 = vld [vmem:[#allocation3] sm:$0xff]  ;;  %v1877_v16 = vld [vmem:[#allocation3 + $0x8] sm:$0xff] }
 0x2f1   : > { %2294 = vrot.lane.b32.xlu1 %v1957_v62, %s3527_s24  ;;  %3414 = vmatpush3.bf16.msra.mxu1 %v3411_v38 }
 0x2f2   : > { %2232 = vrot.lane.b32.xlu0 %v1942_v50, %s3523_s20  ;;  %3416 = vmatprep.subr.bf16.mxu1 %v3415_v56 }
 0x2f5   : > { %2106 = vrot.lane.b32.xlu1 %v1957_v62, %s3519_s15  ;;  %3418 = vmatpush3.bf16.msra.mxu1 %v3415_v56  ;;  %v4705_v62 = vld [vmem:[#allocation3 + $0x90] sm:$0xff]  ;;  %v4727_v56 = vld [vmem:[#allocation3 + $0x98] sm:$0xff] }
 0x2f6   : > { %2044 = vrot.lane.b32.xlu0 %v1942_v50, %s3516_s28  ;;  %3369 = vmatprep.subr.mxu1 %v2674_v28 }
 0x2f9   : > { %2358 = vrot.lane.b32.xlu1 %v4578_v10, %s3528_s29  ;;  %3370 = vmatpush3.msra.mxu1 %v2674_v28 }
 0x2fa   : > { %2296 = vrot.lane.b32.xlu0 %v1958_v36, %s3527_s24 }
 0x2fd   : > { %2170 = vrot.lane.b32.xlu1 %v4578_v10, %s3521_s21 }
 0x2fe   : > { %2108 = vrot.lane.b32.xlu0 %v1958_v36, %s3519_s15 }
 0x301   : > { %2422 = vrot.lane.b32.xlu1 %v1990_v41, %s3529_s17 }
 0x302   : > { %2360 = vrot.lane.b32.xlu0 %v4598_v0, %s3528_s29 }
 0x305   : > { %2234 = vrot.lane.b32.xlu1 %v1990_v41, %s3523_s20 }
 0x306   : > { %2172 = vrot.lane.b32.xlu0 %v4598_v0, %s3521_s21 }
 0x309   : > { %2486 = vrot.lane.b32.xlu1 %v2006_v20, %s3530_s27 }
 0x30a   : > { %2424 = vrot.lane.b32.xlu0 %v1991_v47, %s3529_s17 }
 0x30d   : > { %2236 = vrot.lane.b32.xlu1 %v1991_v47, %s3523_s20 }
 0x30e   : > { %2046 = vrot.lane.b32.xlu0 %v1990_v41, %s3516_s28  ;;  %v1998_v41 = vld [vmem:[#allocation3 + $0x91] sm:$0xff] }
 0x311   : > { %2488 = vrot.lane.b32.xlu1 %v2007_v32, %s3530_s27 }
 0x312   : > { %2298 = vrot.lane.b32.xlu0 %v2006_v20, %s3527_s24 }
 0x315   : > { %2110 = vrot.lane.b32.xlu1 %v2006_v20, %s3519_s15 }
 0x316   : > { %2048 = vrot.lane.b32.xlu0 %v1991_v47, %s3516_s28 }
 0x319   : > { %2362 = vrot.lane.b32.xlu1 %v4617_v39, %s3528_s29 }
 0x31a   : > { %2300 = vrot.lane.b32.xlu0 %v2007_v32, %s3527_s24 }
 0x31d   : > { %2174 = vrot.lane.b32.xlu1 %v4617_v39, %s3521_s21 }
 0x31e   : > { %2112 = vrot.lane.b32.xlu0 %v2007_v32, %s3519_s15 }
 0x321   : > { %2426 = vrot.lane.b32.xlu1 %v1992_v48, %s3529_s17 }
 0x322   : > { %2364 = vrot.lane.b32.xlu0 %v4625_v43, %s3528_s29 }
 0x325   : > { %2238 = vrot.lane.b32.xlu1 %v1992_v48, %s3523_s20 }
 0x326   : > { %2176 = vrot.lane.b32.xlu0 %v4625_v43, %s3521_s21 }
 0x329   : > { %2490 = vrot.lane.b32.xlu1 %v2008_v44, %s3530_s27 }
 0x32a   : > { %2428 = vrot.lane.b32.xlu0 %v1993_v34, %s3529_s17 }
 0x32d   : > { %2240 = vrot.lane.b32.xlu1 %v1993_v34, %s3523_s20 }
 0x32e   : > { %2050 = vrot.lane.b32.xlu0 %v1992_v48, %s3516_s28 }
 0x331   : > { %2492 = vrot.lane.b32.xlu1 %v2009_v60, %s3530_s27 }
 0x332   : > { %2302 = vrot.lane.b32.xlu0 %v2008_v44, %s3527_s24 }
 0x335   : > { %2114 = vrot.lane.b32.xlu1 %v2008_v44, %s3519_s15 }
 0x336   : > { %2052 = vrot.lane.b32.xlu0 %v1993_v34, %s3516_s28 }
 0x339   : > { %2366 = vrot.lane.b32.xlu1 %v4641_v45, %s3528_s29 }
 0x33a   : > { %2304 = vrot.lane.b32.xlu0 %v2009_v60, %s3527_s24 }
 0x33d   : > { %2178 = vrot.lane.b32.xlu1 %v4641_v45, %s3521_s21 }
 0x33e   : > { %2116 = vrot.lane.b32.xlu0 %v2009_v60, %s3519_s15 }
 0x341   : > { %2430 = vrot.lane.b32.xlu1 %v1994_v51, %s3529_s17 }
 0x342   : > { %2368 = vrot.lane.b32.xlu0 %v4649_v52, %s3528_s29 }
 0x345   : > { %2242 = vrot.lane.b32.xlu1 %v1994_v51, %s3523_s20 }
 0x346   : > { %2180 = vrot.lane.b32.xlu0 %v4649_v52, %s3521_s21 }
 0x349   : > { %2494 = vrot.lane.b32.xlu1 %v2010_v59, %s3530_s27 }
 0x34a   : > { %2432 = vrot.lane.b32.xlu0 %v1995_v63, %s3529_s17 }
 0x34d   : > { %2244 = vrot.lane.b32.xlu1 %v1995_v63, %s3523_s20 }
 0x34e   : > { %2054 = vrot.lane.b32.xlu0 %v1994_v51, %s3516_s28 }
 0x351   : > { %2496 = vrot.lane.b32.xlu1 %v2011_v1, %s3530_s27 }
 0x352   : > { %2306 = vrot.lane.b32.xlu0 %v2010_v59, %s3527_s24 }
 0x353   : > { %v2103_v54 = vpop.permute.xlu1 %2102 }
 0x354   : > { %v2039_v31 = vpop.permute.xlu0 %2038 }
 0x355   : > { %2118 = vrot.lane.b32.xlu1 %v2010_v59, %s3519_s15  ;;  %v2534_v21 = vsel %vm1314_vm4, %v1876_v46, %v2039_v31 }
 0x356   : > { %2056 = vrot.lane.b32.xlu0 %v1995_v63, %s3516_s28  ;;  %v2550_v30 = vsel %vm1356_vm6, %v2534_v21, %v2103_v54  ;;  %v2014_v63 = vld [vmem:[#allocation3 + $0x92] sm:$0xff] }
 0x357   : > { %v4667_v55 = vpop.permute.xlu1 %2104 }
 0x358   : > { %v2041_v58 = vpop.permute.xlu0 %2040 }
 0x359   : > { %2370 = vrot.lane.b32.xlu1 %v4665_v37, %s3528_s29  ;;  %v2535_v36 = vsel %vm1314_vm4, %v1877_v16, %v2041_v58 }
 0x35a   : > { %2308 = vrot.lane.b32.xlu0 %v2011_v1, %s3527_s24  ;;  %v2551_v29 = vsel %vm1356_vm6, %v2535_v36, %v4667_v55 }
 0x35b   : > { %v4672_v42 = vpop.permute.xlu1 %2168 }
 0x35c   : > { %v2167_v53 = vpop.permute.xlu0 %2166  ;;  %v2567_v28 = vsel %vm1398_vm8, %v2551_v29, %v4672_v42  ;;  %v2015_v42 = vld [vmem:[#allocation3 + $0x9a] sm:$0xff] }
 0x35d   : > { %2182 = vrot.lane.b32.xlu1 %v4665_v37, %s3521_s21  ;;  %v2566_v50 = vsel %vm1398_vm8, %v2550_v30, %v2167_v53 }
 0x35e   : > { %2120 = vrot.lane.b32.xlu0 %v2011_v1, %s3519_s15  ;;  %v1999_v1 = vld [vmem:[#allocation3 + $0x99] sm:$0xff] }
 0x35f   : > { %v4679_v8 = vpop.permute.xlu1 %2042 }
 0x360   : > { %v2231_v49 = vpop.permute.xlu0 %2230 }
 0x361   : > { %2434 = vrot.lane.b32.xlu1 %v1996_v3, %s3529_s17  ;;  %v2582_v9 = vsel %vm1440_vm10, %v2566_v50, %v2231_v49  ;;  %v2000_v50 = vld [vmem:[#allocation3 + $0xa9] sm:$0xff] }
 0x362   : > { %2372 = vrot.lane.b32.xlu0 %v4677_v7, %s3528_s29 }
 0x363   : > { %v2295_v57 = vpop.permute.xlu1 %2294 }
 0x364   : > { %v2233_v15 = vpop.permute.xlu0 %2232  ;;  %v2599_v14 = vsel %vm2598_vm12, %v2582_v9, %v2295_v57 }
 0x365   : > { %2246 = vrot.lane.b32.xlu1 %v1996_v3, %s3523_s20  ;;  %v2583_v32 = vsel %vm1440_vm10, %v2567_v28, %v2233_v15  ;;  %v2536_v15 = vsel %vm1314_vm4, %v4554_v26, %v4679_v8 }
 0x366   : > { %2184 = vrot.lane.b32.xlu0 %v4677_v7, %s3521_s21 }
 0x367   : > { %v4687_v6 = vpop.permute.xlu1 %2106 }
 0x368   : > { %v4689_v5 = vpop.permute.xlu0 %2044 }
 0x369   : > { %2498 = vrot.lane.b32.xlu1 %v2012_v18, %s3530_s27 }
 0x36a   : > { %2436 = vrot.lane.b32.xlu0 %v1997_v13, %s3529_s17 }
 0x36b   : > { %v2359_v19 = vpop.permute.xlu1 %2358 }
 0x36c   : > { %v2297_v61 = vpop.permute.xlu0 %2296  ;;  %v2616_v35 = vsel %vm2615_vm13, %v2599_v14, %v2359_v19 }
 0x36d   : > { %2248 = vrot.lane.b32.xlu1 %v1997_v13, %s3523_s20  ;;  %v2600_v48 = vsel %vm2598_vm12, %v2583_v32, %v2297_v61 }
 0x36e   : > { %2058 = vrot.lane.b32.xlu0 %v1996_v3, %s3516_s28 }
 0x36f   : > { %v4695_v4 = vpop.permute.xlu1 %2170 }
 0x370   : > { %v4697_v17 = vpop.permute.xlu0 %2108 }
 0x371   : > { %2500 = vrot.lane.b32.xlu1 %v2013_v2, %s3530_s27 }
 0x372   : > { %2310 = vrot.lane.b32.xlu0 %v2012_v18, %s3527_s24 }
 0x373   : > { %v2423_v11 = vpop.permute.xlu1 %2422 }
 0x374   : > { %v2361_v22 = vpop.permute.xlu0 %2360  ;;  %v2633_v23 = vsel %vm2632_vm14, %v2616_v35, %v2423_v11 }
 0x375   : > { %2122 = vrot.lane.b32.xlu1 %v2012_v18, %s3519_s15  ;;  %v2617_v44 = vsel %vm2615_vm13, %v2600_v48, %v2361_v22  ;;  %v2552_v18 = vsel %vm1356_vm6, %v2536_v15, %v4687_v6  ;;  %v2537_v22 = vsel %vm1314_vm4, %v4552_v24, %v4689_v5 }
 0x376   : > { %2060 = vrot.lane.b32.xlu0 %v1997_v13, %s3516_s28  ;;  %v4766_v13 = vld [vmem:[#allocation3 + $0xa8] sm:$0xff]  ;;  %v2568_v19 = vsel %vm1398_vm8, %v2552_v18, %v4695_v4  ;;  %v2553_v30 = vsel %vm1356_vm6, %v2537_v22, %v4697_v17 }
 0x377   : > { %v4708_v27 = vpop.permute.xlu1 %2234  ;;  %v2002_v18 = vld [vmem:[#allocation3 + $0xc1] sm:$0xff] }
 0x378   : > { %v4710_v33 = vpop.permute.xlu0 %2172  ;;  %v2584_v46 = vsel %vm1440_vm10, %v2568_v19, %v4708_v27  ;;  %v4790_v27 = vld [vmem:[#allocation3 + $0xb0] sm:$0xff]  ;;  %v1987_v19 = vld [vmem:[#allocation3 + $0xc8] sm:$0xff] }
 0x379   : > { %2374 = vrot.lane.b32.xlu1 %v4705_v62, %s3528_s29  ;;  %v2569_v16 = vsel %vm1398_vm8, %v2553_v30, %v4710_v33 }
 0x37a   : > { %2312 = vrot.lane.b32.xlu0 %v2013_v2, %s3527_s24 }
 0x37b   : > { %v2487_v25 = vpop.permute.xlu1 %2486 }
 0x37c   : > { %v2425_v38 = vpop.permute.xlu0 %2424  ;;  %v2650_v40 = vsel %vm2649_vm15, %v2633_v23, %v2487_v25  ;;  %v2016_v25 = vld [vmem:[#allocation3 + $0xaa] sm:$0xff] }
 0x37d   : > { %2186 = vrot.lane.b32.xlu1 %v4705_v62, %s3521_s21  ;;  %3371 = vmatprep.mubr.msk.f32.mxu1 %vm2675_vm0, %v2650_v40  ;;  %v2634_v34 = vsel %vm2632_vm14, %v2617_v44, %v2425_v38  ;;  %v2001_v38 = vld [vmem:[#allocation3 + $0xb1] sm:$0xff] }
 0x37e   : > { %2124 = vrot.lane.b32.xlu0 %v2013_v2, %s3519_s15 }
 0x37f   : > { %v2237_v20 = vpop.permute.xlu1 %2236 }
 0x380   : > { %v4731_v47 = vpop.permute.xlu0 %2046  ;;  %v2585_v24 = vsel %vm1440_vm10, %v2569_v16, %v2237_v20  ;;  %v2017_v20 = vld [vmem:[#allocation3 + $0xb2] sm:$0xff] }
 0x381   : > { %2438 = vrot.lane.b32.xlu1 %v1998_v41, %s3529_s17 }
 0x382   : > { %2376 = vrot.lane.b32.xlu0 %v4727_v56, %s3528_s29 }
 0x383   : > { %v2489_v60 = vpop.permute.xlu1 %2488 }
 0x384   : > { %v2299_v51 = vpop.permute.xlu0 %2298  ;;  %v2651_v59 = vsel %vm2649_vm15, %v2634_v34, %v2489_v60  ;;  %v2538_v60 = vsel %vm1314_vm4, %v4578_v10, %v4731_v47 }
 0x385   : > { %2250 = vrot.lane.b32.xlu1 %v1998_v41, %s3523_s20  ;;  %3372 = vmatmul.mubr.msk.f32.vlgmr.msra.gmra.mrb[0].mxu1 %vm2675_vm0, %v2651_v59  ;;  %v2601_v26 = vsel %vm2598_vm12, %v2584_v46, %v2299_v51  ;;  %v1986_v59 = vld [vmem:[#allocation3 + $0xc0] sm:$0xff] }
 0x386   : > { %2188 = vrot.lane.b32.xlu0 %v4727_v56, %s3521_s21 }
 0x387   : > { %v4745_v54 = vpop.permute.xlu1 %2110 }
 0x388   : > { %v4747_v31 = vpop.permute.xlu0 %2048  ;;  %v2554_v51 = vsel %vm1356_vm6, %v2538_v60, %v4745_v54 }
 0x389   : > { %2502 = vrot.lane.b32.xlu1 %v2014_v63, %s3530_s27 }
 0x38a   : > { %2440 = vrot.lane.b32.xlu0 %v1999_v1, %s3529_s17 }
 0x38b   : > { %v2363_v55 = vpop.permute.xlu1 %2362 }
 0x38c   : > { %v2301_v58 = vpop.permute.xlu0 %2300  ;;  %v2618_v8 = vsel %vm2615_vm13, %v2601_v26, %v2363_v55 }
 0x38d   : > { %2252 = vrot.lane.b32.xlu1 %v1999_v1, %s3523_s20  ;;  %v2602_v5 = vsel %vm2598_vm12, %v2585_v24, %v2301_v58 }
 0x38e   : > { %2062 = vrot.lane.b32.xlu0 %v1998_v41, %s3516_s28 }
 0x38f   : > { %v4753_v53 = vpop.permute.xlu1 %2174 }
 0x390   : > { %v4755_v3 = vpop.permute.xlu0 %2112 }
 0x391   : > { %2504 = vrot.lane.b32.xlu1 %v2015_v42, %s3530_s27 }
 0x392   : > { %2314 = vrot.lane.b32.xlu0 %v2014_v63, %s3527_s24 }
 0x393   : > { %v2427_v49 = vpop.permute.xlu1 %2426 }
 0x394   : > { %v2365_v57 = vpop.permute.xlu0 %2364  ;;  %v2635_v6 = vsel %vm2632_vm14, %v2618_v8, %v2427_v49 }
 0x395   : > { %2126 = vrot.lane.b32.xlu1 %v2014_v63, %s3519_s15  ;;  %v2619_v17 = vsel %vm2615_vm13, %v2602_v5, %v2365_v57  ;;  %v2570_v63 = vsel %vm1398_vm8, %v2554_v51, %v4753_v53  ;;  %v2539_v53 = vsel %vm1314_vm4, %v4598_v0, %v4747_v31  ;;  %v2020_v51 = vld [vmem:[#allocation3 + $0xda] sm:$0xff] }
 0x396   : > { %2064 = vrot.lane.b32.xlu0 %v1999_v1, %s3516_s28  ;;  %v2555_v15 = vsel %vm1356_vm6, %v2539_v53, %v4755_v3 }
 0x397   : > { %v2239_v61 = vpop.permute.xlu1 %2238 }
 0x398   : > { %v4770_v2 = vpop.permute.xlu0 %2176  ;;  %v2586_v58 = vsel %vm1440_vm10, %v2570_v63, %v2239_v61 }
 0x399   : > { %2378 = vrot.lane.b32.xlu1 %v4766_v13, %s3528_s29  ;;  %v2571_v61 = vsel %vm1398_vm8, %v2555_v15, %v4770_v2  ;;  %v2018_v2 = vld [vmem:[#allocation3 + $0xc2] sm:$0xff] }
 0x39a   : > { %2316 = vrot.lane.b32.xlu0 %v2015_v42, %s3527_s24 }
 0x39b   : > { %v2491_v21 = vpop.permute.xlu1 %2490 }
 0x39c   : > { %v2429_v11 = vpop.permute.xlu0 %2428  ;;  %v2652_v4 = vsel %vm2649_vm15, %v2635_v6, %v2491_v21 }
 0x39d   : > { %2190 = vrot.lane.b32.xlu1 %v4766_v13, %s3521_s21  ;;  %3374 = vmatprep.mubr.msk.f32.mxu1 %vm2675_vm0, %v2652_v4  ;;  %v2636_v35 = vsel %vm2632_vm14, %v2619_v17, %v2429_v11  ;;  %v2003_v4 = vld [vmem:[#allocation3 + $0xc9] sm:$0xff]  ;;  %v1989_v17 = vld [vmem:[#allocation3 + $0xe0] sm:$0xff] }
 0x39e   : > { %2128 = vrot.lane.b32.xlu0 %v2015_v42, %s3519_s15 }
 0x39f   : > { %v2241_v9 = vpop.permute.xlu1 %2240 }
 0x3a0   : > { %v4794_v14 = vpop.permute.xlu0 %2050  ;;  %v2587_v8 = vsel %vm1440_vm10, %v2571_v61, %v2241_v9  ;;  %v1972_v9 = vld [vmem:[#allocation3 + $0xca] sm:$0xff] }
 0x3a1   : > { %2442 = vrot.lane.b32.xlu1 %v2000_v50, %s3529_s17 }
 0x3a2   : > { %2380 = vrot.lane.b32.xlu0 %v4790_v27, %s3528_s29 }
 0x3a3   : > { %v2493_v36 = vpop.permute.xlu1 %2492 }
 0x3a4   : > { %v2303_v23 = vpop.permute.xlu0 %2302  ;;  %v2653_v33 = vsel %vm2649_vm15, %v2636_v35, %v2493_v36  ;;  %v1988_v35 = vld [vmem:[#allocation3 + $0xd8] sm:$0xff] }
 0x3a5   : > { %2254 = vrot.lane.b32.xlu1 %v2000_v50, %s3523_s20  ;;  %3375 = vmatmul.mubr.msk.f32.gmra.mrb[2].mxu1 %vm2675_vm0, %v2653_v33  ;;  %v2603_v42 = vsel %vm2598_vm12, %v2586_v58, %v2303_v23  ;;  %v2540_v33 = vsel %vm1314_vm4, %v4617_v39, %v4794_v14  ;;  %v2021_v14 = vld [vmem:[#allocation3 + $0xe2] sm:$0xff] }
 0x3a6   : > { %2192 = vrot.lane.b32.xlu0 %v4790_v27, %s3521_s21 }
 0x3a7   : > { %v4808_v40 = vpop.permute.xlu1 %2114 }
 0x3a8   : > { %v4810_v29 = vpop.permute.xlu0 %2052 }
 0x3a9   : > { %2506 = vrot.lane.b32.xlu1 %v2016_v25, %s3530_s27 }
 0x3aa   : > { %2444 = vrot.lane.b32.xlu0 %v2001_v38, %s3529_s17 }
 0x3ab   : > { %v2367_v41 = vpop.permute.xlu1 %2366 }
 0x3ac   : > { %v2305_v28 = vpop.permute.xlu0 %2304  ;;  %v2620_v10 = vsel %vm2615_vm13, %v2603_v42, %v2367_v41  ;;  %v2004_v41 = vld [vmem:[#allocation3 + $0xd9] sm:$0xff] }
 0x3ad   : > { %2256 = vrot.lane.b32.xlu1 %v2001_v38, %s3523_s20  ;;  %v2604_v0 = vsel %vm2598_vm12, %v2587_v8, %v2305_v28 }
 0x3ae   : > { %2066 = vrot.lane.b32.xlu0 %v2000_v50, %s3516_s28 }
 0x3af   : > { %v4816_v32 = vpop.permute.xlu1 %2178 }
 0x3b0   : > { %v4818_v48 = vpop.permute.xlu0 %2116 }
 0x3b1   : > { %2508 = vrot.lane.b32.xlu1 %v2017_v20, %s3530_s27 }
 0x3b2   : > { %2318 = vrot.lane.b32.xlu0 %v2016_v25, %s3527_s24 }
 0x3b3   : > { %v2431_v44 = vpop.permute.xlu1 %2430 }
 0x3b4   : > { %v2369_v34 = vpop.permute.xlu0 %2368  ;;  %v2637_v47 = vsel %vm2632_vm14, %v2620_v10, %v2431_v44 }
 0x3b5   : > { %2130 = vrot.lane.b32.xlu1 %v2016_v25, %s3519_s15  ;;  %v2621_v31 = vsel %vm2615_vm13, %v2604_v0, %v2369_v34  ;;  %v2556_v25 = vsel %vm1356_vm6, %v2540_v33, %v4808_v40 }
 0x3b6   : > { %2068 = vrot.lane.b32.xlu0 %v2001_v38, %s3516_s28  ;;  %v2005_v38 = vld [vmem:[#allocation3 + $0xe1] sm:$0xff]  ;;  %v2572_v28 = vsel %vm1398_vm8, %v2556_v25, %v4816_v32 }
 0x3b7   : > { %v2243_v1 = vpop.permute.xlu1 %2242 }
 0x3b8   : > { %v4831_v55 = vpop.permute.xlu0 %2180  ;;  %v2588_v34 = vsel %vm1440_vm10, %v2572_v28, %v2243_v1  ;;  %v2541_v1 = vsel %vm1314_vm4, %v4625_v43, %v4810_v29 }
 0x3b9   : > { %2382 = vrot.lane.b32.xlu1 %v1986_v59, %s3528_s29  ;;  %v2557_v58 = vsel %vm1356_vm6, %v2541_v1, %v4818_v48 }
 0x3ba   : > { %2320 = vrot.lane.b32.xlu0 %v2017_v20, %s3527_s24  ;;  %v2573_v42 = vsel %vm1398_vm8, %v2557_v58, %v4831_v55 }
 0x3bb   : > { %v2495_v54 = vpop.permute.xlu1 %2494 }
 0x3bc   : > { %v2433_v49 = vpop.permute.xlu0 %2432  ;;  %v2654_v57 = vsel %vm2649_vm15, %v2637_v47, %v2495_v54 }
 0x3bd   : > { %2194 = vrot.lane.b32.xlu1 %v1986_v59, %s3521_s21  ;;  %3377 = vmatprep.mubr.msk.f32.mxu1 %vm2675_vm0, %v2654_v57  ;;  %v2638_v3 = vsel %vm2632_vm14, %v2621_v31, %v2433_v49 }
 0x3be   : > { %2132 = vrot.lane.b32.xlu0 %v2017_v20, %s3519_s15 }
 0x3bf   : > { %v2245_v46 = vpop.permute.xlu1 %2244 }
 0x3c0   : > { %v4850_v26 = vpop.permute.xlu0 %2054  ;;  %v2589_v54 = vsel %vm1440_vm10, %v2573_v42, %v2245_v46 }
 0x3c1   : > { %2446 = vrot.lane.b32.xlu1 %v2002_v18, %s3529_s17  ;;  %v2542_v31 = vsel %vm1314_vm4, %v4641_v45, %v4850_v26 }
 0x3c2   : > { %2384 = vrot.lane.b32.xlu0 %v1987_v19, %s3528_s29 }
 0x3c3   : > { %v2497_v6 = vpop.permute.xlu1 %2496 }
 0x3c4   : > { %v2307_v21 = vpop.permute.xlu0 %2306  ;;  %v2655_v11 = vsel %vm2649_vm15, %v2638_v3, %v2497_v6 }
 0x3c5   : > { %2258 = vrot.lane.b32.xlu1 %v2002_v18, %s3523_s20  ;;  %3378 = vmatmul.mubr.msk.f32.gmra.mrb[4].mxu1 %vm2675_vm0, %v2655_v11  ;;  %v2605_v60 = vsel %vm2598_vm12, %v2588_v34, %v2307_v21 }
 0x3c6   : > { %2196 = vrot.lane.b32.xlu0 %v1987_v19, %s3521_s21 }
 0x3c7   : > { %v4862_v22 = vpop.permute.xlu1 %2118 }
 0x3c8   : > { %v4864_v30 = vpop.permute.xlu0 %2056  ;;  %v2558_v3 = vsel %vm1356_vm6, %v2542_v31, %v4862_v22 }
 0x3c9   : > { %2510 = vrot.lane.b32.xlu1 %v2018_v2, %s3530_s27  ;;  %v2543_v45 = vsel %vm1314_vm4, %v4649_v52, %v4864_v30 }
 0x3ca   : > { %2448 = vrot.lane.b32.xlu0 %v2003_v4, %s3529_s17 }
 0x3cb   : > { %v2371_v50 = vpop.permute.xlu1 %2370 }
 0x3cc   : > { %v2309_v16 = vpop.permute.xlu0 %2308  ;;  %v2622_v39 = vsel %vm2615_vm13, %v2605_v60, %v2371_v50 }
 0x3cd   : > { %2322 = vrot.lane.b32.xlu1 %v2018_v2, %s3527_s24  ;;  %v2606_v49 = vsel %vm2598_vm12, %v2589_v54, %v2309_v16 }
 0x3ce   : > { %2260 = vrot.lane.b32.xlu0 %v2003_v4, %s3523_s20 }
 0x3cf   : > { %v2183_v24 = vpop.permute.xlu1 %2182 }
 0x3d0   : > { %v4870_v5 = vpop.permute.xlu0 %2120  ;;  %v2574_v6 = vsel %vm1398_vm8, %v2558_v3, %v2183_v24 }
 0x3d1   : > { %2324 = vrot.lane.b32.xlu1 %v1972_v9, %s3527_s24  ;;  %v2559_v26 = vsel %vm1356_vm6, %v2543_v45, %v4870_v5 }
 0x3d2   : > { %2512 = vrot.lane.b32.xlu0 %v1972_v9, %s3530_s27 }
 0x3d3   : > { %v2435_v36 = vpop.permute.xlu1 %2434 }
 0x3d4   : > { %v2373_v23 = vpop.permute.xlu0 %2372  ;;  %v2639_v40 = vsel %vm2632_vm14, %v2622_v39, %v2435_v36 }
 0x3d5   : > { %2388 = vrot.lane.b32.xlu1 %v1989_v17, %s3528_s29  ;;  %v2623_v43 = vsel %vm2615_vm13, %v2606_v49, %v2373_v23 }
 0x3d6   : > { %2386 = vrot.lane.b32.xlu0 %v1988_v35, %s3528_s29 }
 0x3d7   : > { %v2247_v20 = vpop.permute.xlu1 %2246 }
 0x3d8   : > { %v2185_v44 = vpop.permute.xlu0 %2184  ;;  %v2590_v2 = vsel %vm1440_vm10, %v2574_v6, %v2247_v20 }
 0x3d9   : > { %2452 = vrot.lane.b32.xlu1 %v2005_v38, %s3529_s17  ;;  %v2575_v22 = vsel %vm1398_vm8, %v2559_v26, %v2185_v44 }
 0x3da   : > { %2450 = vrot.lane.b32.xlu0 %v2004_v41, %s3529_s17 }
 0x3db   : > { %v2499_v59 = vpop.permute.xlu1 %2498 }
 0x3dc   : > { %v2437_v63 = vpop.permute.xlu0 %2436  ;;  %v2656_v32 = vsel %vm2649_vm15, %v2639_v40, %v2499_v59 }
 0x3dd   : > { %2516 = vrot.lane.b32.xlu1 %v2021_v14, %s3530_s27  ;;  %3380 = vmatprep.mubr.msk.f32.mxu1 %vm2675_vm0, %v2656_v32  ;;  %v2640_v29 = vsel %vm2632_vm14, %v2623_v43, %v2437_v63 }
 0x3de   : > { %2514 = vrot.lane.b32.xlu0 %v2020_v51, %s3530_s27 }
 0x3df   : > { %v2249_v10 = vpop.permute.xlu1 %2248 }
 0x3e0   : > { %v2059_v47 = vpop.permute.xlu0 %2058  ;;  %v2591_v23 = vsel %vm1440_vm10, %v2575_v22, %v2249_v10 }
 0x3e1   : > { %v2544_v51 = vsel %vm1314_vm4, %v4665_v37, %v2059_v47 }
 0x3e3   : > { %v2501_v57 = vpop.permute.xlu1 %2500 }
 0x3e4   : > { %v2311_v53 = vpop.permute.xlu0 %2310  ;;  %v2657_v15 = vsel %vm2649_vm15, %v2640_v29, %v2501_v57 }
 0x3e5   : > { %3381 = vmatmul.mubr.msk.f32.gmra.mrb[6].mxu1 %vm2675_vm0, %v2657_v15  ;;  %v2607_v4 = vsel %vm2598_vm12, %v2590_v2, %v2311_v53 }
 0x3e7   : > { %v2123_v48 = vpop.permute.xlu1 %2122 }
 0x3e8   : > { %v2061_v18 = vpop.permute.xlu0 %2060  ;;  %v2560_v40 = vsel %vm1356_vm6, %v2544_v51, %v2123_v48 }
 0x3e9   : > { %v2545_v37 = vsel %vm1314_vm4, %v4677_v7, %v2061_v18 }
 0x3eb   : > { %v2375_v19 = vpop.permute.xlu1 %2374 }
 0x3ec   : > { %v2313_v55 = vpop.permute.xlu0 %2312  ;;  %v2624_v50 = vsel %vm2615_vm13, %v2607_v4, %v2375_v19 }
 0x3ed   : > { %v2608_v33 = vsel %vm2598_vm12, %v2591_v23, %v2313_v55 }
 0x3ef   : > { %v2187_v61 = vpop.permute.xlu1 %2186 }
 0x3f0   : > { %v2125_v8 = vpop.permute.xlu0 %2124  ;;  %v2576_v59 = vsel %vm1398_vm8, %v2560_v40, %v2187_v61 }
 0x3f1   : > { %v2561_v47 = vsel %vm1356_vm6, %v2545_v37, %v2125_v8 }
 0x3f3   : > { %v2439_v0 = vpop.permute.xlu1 %2438 }
 0x3f4   : > { %v2377_v46 = vpop.permute.xlu0 %2376  ;;  %v2641_v16 = vsel %vm2632_vm14, %v2624_v50, %v2439_v0 }
 0x3f5   : > { %v2625_v25 = vsel %vm2615_vm13, %v2608_v33, %v2377_v46 }
 0x3f7   : > { %v2251_v21 = vpop.permute.xlu1 %2250 }
 0x3f8   : > { %v2189_v11 = vpop.permute.xlu0 %2188  ;;  %v2592_v1 = vsel %vm1440_vm10, %v2576_v59, %v2251_v21 }
 0x3f9   : > { %v2577_v29 = vsel %vm1398_vm8, %v2561_v47, %v2189_v11 }
 0x3fb   : > { %v2503_v9 = vpop.permute.xlu1 %2502 }
 0x3fc   : > { %v2441_v17 = vpop.permute.xlu0 %2440  ;;  %v2658_v35 = vsel %vm2649_vm15, %v2641_v16, %v2503_v9 }
 0x3fd   : > { %3383 = vmatprep.mubr.msk.f32.mxu1 %vm2675_vm0, %v2658_v35  ;;  %v2642_v38 = vsel %vm2632_vm14, %v2625_v25, %v2441_v17 }
 0x3ff   : > { %v2253_v24 = vpop.permute.xlu1 %2252 }
 0x400   : > { %v2063_v36 = vpop.permute.xlu0 %2062  ;;  %v2593_v15 = vsel %vm1440_vm10, %v2577_v29, %v2253_v24 }
 0x401   : > { %v2546_v2 = vsel %vm1314_vm4, %v4705_v62, %v2063_v36 }
 0x403   : > { %v2505_v41 = vpop.permute.xlu1 %2504 }
 0x404   : > { %v2315_v28 = vpop.permute.xlu0 %2314  ;;  %v2659_v52 = vsel %vm2649_vm15, %v2642_v38, %v2505_v41 }
 0x405   : > { %3384 = vmatmul.mubr.msk.f32.gmra.mrb[8].mxu1 %vm2675_vm0, %v2659_v52  ;;  %v2609_v58 = vsel %vm2598_vm12, %v2592_v1, %v2315_v28 }
 0x407   : > { %v2127_v30 = vpop.permute.xlu1 %2126 }
 0x408   : > { %v2065_v5 = vpop.permute.xlu0 %2064  ;;  %v2562_v4 = vsel %vm1356_vm6, %v2546_v2, %v2127_v30 }
 0x409   : > { %v2547_v62 = vsel %vm1314_vm4, %v4727_v56, %v2065_v5 }
 0x40b   : > { %v2379_v20 = vpop.permute.xlu1 %2378 }
 0x40c   : > { %v2317_v44 = vpop.permute.xlu0 %2316  ;;  %v2626_v42 = vsel %vm2615_vm13, %v2609_v58, %v2379_v20 }
 0x40d   : > { %v2610_v48 = vsel %vm2598_vm12, %v2593_v15, %v2317_v44  ;;  %v4998_v15 = vld [vmem:[%s5101_s6] ss:$0 sm:$0xff] }
 0x40f   : > { %v2191_v34 = vpop.permute.xlu1 %2190 }
 0x410   : > { %v2129_v60 = vpop.permute.xlu0 %2128  ;;  %v2578_v50 = vsel %vm1398_vm8, %v2562_v4, %v2191_v34 }
 0x411   : > { %v2563_v36 = vsel %vm1356_vm6, %v2547_v62, %v2129_v60 }
 0x413   : > { %v2443_v39 = vpop.permute.xlu1 %2442 }
 0x414   : > { %v2381_v14 = vpop.permute.xlu0 %2380  ;;  %v2643_v10 = vsel %vm2632_vm14, %v2626_v42, %v2443_v39 }
 0x415   : > { %v2627_v19 = vsel %vm2615_vm13, %v2610_v48, %v2381_v14 }
 0x417   : > { %v2255_v63 = vpop.permute.xlu1 %2254 }
 0x418   : > { %v2193_v32 = vpop.permute.xlu0 %2192  ;;  %v2594_v17 = vsel %vm1440_vm10, %v2578_v50, %v2255_v63 }
 0x419   : > { %v2579_v33 = vsel %vm1398_vm8, %v2563_v36, %v2193_v32 }
 0x41b   : > { %v2507_v54 = vpop.permute.xlu1 %2506 }
 0x41c   : > { %v2445_v49 = vpop.permute.xlu0 %2444  ;;  %v2660_v43 = vsel %vm2649_vm15, %v2643_v10, %v2507_v54 }
 0x41d   : > { %3386 = vmatprep.mubr.msk.f32.mxu1 %vm2675_vm0, %v2660_v43  ;;  %v2644_v55 = vsel %vm2632_vm14, %v2627_v19, %v2445_v49 }
 0x41f   : > { %v2257_v57 = vpop.permute.xlu1 %2256 }
 0x420   : > { %v2067_v53 = vpop.permute.xlu0 %2066  ;;  %v2595_v41 = vsel %vm1440_vm10, %v2579_v33, %v2257_v57  ;;  %v4993_v57 = vld [vmem:[%s5100_s5] ss:$0 sm:$0xff] }
 0x421   : > { %v2548_v60 = vsel %vm1314_vm4, %v4766_v13, %v2067_v53 }
 0x423   : > { %v2509_v61 = vpop.permute.xlu1 %2508 }
 0x424   : > { %v2319_v0 = vpop.permute.xlu0 %2318  ;;  %v2661_v7 = vsel %vm2649_vm15, %v2644_v55, %v2509_v61 }
 0x425   : > { %3387 = vmatmul.mubr.msk.f32.gmra.mrb[10].mxu1 %vm2675_vm0, %v2661_v7  ;;  %v2611_v35 = vsel %vm2598_vm12, %v2594_v17, %v2319_v0 }
 0x427   : > { %v2131_v18 = vpop.permute.xlu1 %2130 }
 0x428   : > { %v2069_v8 = vpop.permute.xlu0 %2068  ;;  %v2564_v14 = vsel %vm1356_vm6, %v2548_v60, %v2131_v18 }
 0x429   : > { %v2549_v39 = vsel %vm1314_vm4, %v4790_v27, %v2069_v8 }
 0x42b   : > { %v2383_v46 = vpop.permute.xlu1 %2382 }
 0x42c   : > { %v2321_v31 = vpop.permute.xlu0 %2320  ;;  %v2628_v45 = vsel %vm2615_vm13, %v2611_v35, %v2383_v46 }
 0x42d   : > { %v2612_v28 = vsel %vm2598_vm12, %v2595_v41, %v2321_v31 }
 0x42f   : > { %v2195_v3 = vpop.permute.xlu1 %2194 }
 0x430   : > { %v2133_v6 = vpop.permute.xlu0 %2132  ;;  %v2580_v40 = vsel %vm1398_vm8, %v2564_v14, %v2195_v3 }
 0x431   : > { %v2565_v51 = vsel %vm1356_vm6, %v2549_v39, %v2133_v6 }
 0x433   : > { %v2447_v21 = vpop.permute.xlu1 %2446 }
 0x434   : > { %v2385_v11 = vpop.permute.xlu0 %2384  ;;  %v2645_v26 = vsel %vm2632_vm14, %v2628_v45, %v2447_v21 }
 0x435   : > { %v2629_v52 = vsel %vm2615_vm13, %v2612_v28, %v2385_v11 }
 0x437   : > { %v2259_v16 = vpop.permute.xlu1 %2258 }
 0x438   : > { %v2197_v9 = vpop.permute.xlu0 %2196  ;;  %v2596_v1 = vsel %vm1440_vm10, %v2580_v40, %v2259_v16 }
 0x439   : > { %v2581_v59 = vsel %vm1398_vm8, %v2565_v51, %v2197_v9 }
 0x43b   : > { %v2511_v22 = vpop.permute.xlu1 %2510 }
 0x43c   : > { %v2449_v24 = vpop.permute.xlu0 %2448  ;;  %v2662_v23 = vsel %vm2649_vm15, %v2645_v26, %v2511_v22 }
 0x43d   : > { %3389 = vmatprep.mubr.msk.f32.mxu1 %vm2675_vm0, %v2662_v23  ;;  %v2646_v30 = vsel %vm2632_vm14, %v2629_v52, %v2449_v24 }
 0x43f   : > { %v2323_v25 = vpop.permute.xlu1 %2322 }
 0x440   : > { %v2261_v38 = vpop.permute.xlu0 %2260  ;;  %v2613_v42 = vsel %vm2598_vm12, %v2596_v1, %v2323_v25 }
 0x441   : > { %v2597_v58 = vsel %vm1440_vm10, %v2581_v59, %v2261_v38 }
 0x443   : > { %v2325_v20 = vpop.permute.xlu1 %2324 }
 0x444   : > { %v2513_v44 = vpop.permute.xlu0 %2512  ;;  %v2614_v13 = vsel %vm2598_vm12, %v2597_v58, %v2325_v20 }
 0x445   : > { %v2663_v56 = vsel %vm2649_vm15, %v2646_v30, %v2513_v44 }
 0x446   : > { %3390 = vmatmul.mubr.msk.f32.gmra.mrb[12].mxu1 %vm2675_vm0, %v2663_v56 }
 0x447   : > { %v2389_v5 = vpop.permute.xlu1 %2388 }
 0x448   : > { %v2387_v34 = vpop.permute.xlu0 %2386  ;;  %v2631_v27 = vsel %vm2615_vm13, %v2614_v13, %v2389_v5 }
 0x449   : > { %v2630_v10 = vsel %vm2615_vm13, %v2613_v42, %v2387_v34 }
 0x44b   : > { %v2453_v63 = vpop.permute.xlu1 %2452 }
 0x44c   : > { %v2451_v32 = vpop.permute.xlu0 %2450  ;;  %v2648_v54 = vsel %vm2632_vm14, %v2631_v27, %v2453_v63 }
 0x44d   : > { %v2647_v49 = vsel %vm2632_vm14, %v2630_v10, %v2451_v32 }
 0x44f   : > { %v2517_v43 = vpop.permute.xlu1 %2516 }
 0x450   : > { %v2515_v37 = vpop.permute.xlu0 %2514  ;;  %v2665_v47 = vsel %vm2649_vm15, %v2648_v54, %v2517_v43 }
 0x451   : > { %v2664_v29 = vsel %vm2649_vm15, %v2647_v49, %v2515_v37 }
 0x452   : > { %3392 = vmatprep.mubr.msk.f32.mxu1 %vm2675_vm0, %v2664_v29 }
 0x453   : > { %3393 = vmatmul.mubr.msk.f32.gmra.mrb[14].mxu1 %vm2675_vm0, %v2665_v47 }
 0x458   : > { %v3373_v53 = vpop.f32.mrb[0].mxu1 }
 0x459   : > { %v2877_v48 = vmul.f32 %v3373_v53, %v4993_v57  ;;  %v2790_v19 = vpop.f32.mrb[1].mxu1 }
 0x45a   : > { %v2876_v55 = vmul.f32 %v4993_v57, %v2790_v19 }
 0x45b   : > { %v2900_v61 = vadd.f32 %v4998_v15, %v2877_v48 }
 0x45c   : > { %v2899_v0 = vadd.f32 %v4998_v15, %v2876_v55 }
 0x45d   : > { %vm2916_vm4 = vcmp.gt.f32.partialorder %v2900_v61, 0.0  ;;  %v2932_v7 = vmul.f32 %v2900_v61, %v4399_v12 }
 0x45e   : > { %vm2915_vm6 = vcmp.gt.f32.partialorder %v2899_v0, 0.0  ;;  %v2931_v18 = vmul.f32 %v2899_v0, %v4399_v12 }
 0x45f   : > { %v2948_v8 = vsel %vm2916_vm4, %v2900_v61, %v2932_v7 }
 0x460   : > { %2964 = vst.msk [vmem:[%s3622_s25 + $0x8] sm:$0xff] %vm1293_vm3, %v2948_v8  ;;  %v2947_v46 = vsel %vm2915_vm6, %v2899_v0, %v2931_v18 }
 0x461   : > { %2963 = vst.msk [vmem:[%s3622_s25] sm:$0xff] %vm1293_vm3, %v2947_v46 }
 0x478   : > { %v3376_v31 = vpop.f32.mrb[2].mxu1 }
 0x479   : > { %v2879_v3 = vmul.f32 %v3376_v31, %v4993_v57  ;;  %v2800_v6 = vpop.f32.mrb[3].mxu1 }
 0x47a   : > { %v2878_v21 = vmul.f32 %v4993_v57, %v2800_v6 }
 0x47b   : > { %v2902_v11 = vadd.f32 %v4998_v15, %v2879_v3 }
 0x47c   : > { %v2901_v2 = vadd.f32 %v4998_v15, %v2878_v21 }
 0x47d   : > { %vm2918_vm8 = vcmp.gt.f32.partialorder %v2902_v11, 0.0  ;;  %v2934_v4 = vmul.f32 %v2902_v11, %v4399_v12 }
 0x47e   : > { %vm2917_vm10 = vcmp.gt.f32.partialorder %v2901_v2, 0.0  ;;  %v2933_v50 = vmul.f32 %v2901_v2, %v4399_v12 }
 0x47f   : > { %v2950_v16 = vsel %vm2918_vm8, %v2902_v11, %v2934_v4 }
 0x480   : > { %2966 = vst.msk [vmem:[%s3622_s25 + $0x18] sm:$0xff] %vm1293_vm3, %v2950_v16  ;;  %v2949_v9 = vsel %vm2917_vm10, %v2901_v2, %v2933_v50 }
 0x481   : > { %2965 = vst.msk [vmem:[%s3622_s25 + $0x10] sm:$0xff] %vm1293_vm3, %v2949_v9 }
 0x498   : > { %v3379_v17 = vpop.f32.mrb[4].mxu1 }
 0x499   : > { %v2881_v35 = vmul.f32 %v3379_v17, %v4993_v57  ;;  %v2810_v45 = vpop.f32.mrb[5].mxu1 }
 0x49a   : > { %v2880_v26 = vmul.f32 %v4993_v57, %v2810_v45 }
 0x49b   : > { %v2904_v22 = vadd.f32 %v4998_v15, %v2881_v35 }
 0x49c   : > { %v2903_v24 = vadd.f32 %v4998_v15, %v2880_v26 }
 0x49d   : > { %vm2920_vm1 = vcmp.gt.f32.partialorder %v2904_v22, 0.0  ;;  %v2936_v23 = vmul.f32 %v2904_v22, %v4399_v12 }
 0x49e   : > { %vm2919_vm2 = vcmp.gt.f32.partialorder %v2903_v24, 0.0  ;;  %v2935_v62 = vmul.f32 %v2903_v24, %v4399_v12 }
 0x49f   : > { %v2952_v36 = vsel %vm2920_vm1, %v2904_v22, %v2936_v23 }
 0x4a0   : > { %2968 = vst.msk [vmem:[%s3622_s25 + $0x28] sm:$0xff] %vm1293_vm3, %v2952_v36  ;;  %v2951_v33 = vsel %vm2919_vm2, %v2903_v24, %v2935_v62 }
 0x4a1   : > { %2967 = vst.msk [vmem:[%s3622_s25 + $0x20] sm:$0xff] %vm1293_vm3, %v2951_v33 }
 0x4b8   : > { %v3382_v25 = vpop.f32.mrb[6].mxu1 }
 0x4b9   : > { %v2883_v38 = vmul.f32 %v3382_v25, %v4993_v57  ;;  %v2820_v41 = vpop.f32.mrb[7].mxu1 }
 0x4ba   : > { %v2882_v28 = vmul.f32 %v4993_v57, %v2820_v41 }
 0x4bb   : > { %v2906_v52 = vadd.f32 %v4998_v15, %v2883_v38 }
 0x4bc   : > { %v2905_v30 = vadd.f32 %v4998_v15, %v2882_v28 }
 0x4bd   : > { %vm2922_vm5 = vcmp.gt.f32.partialorder %v2906_v52, 0.0  ;;  %v2938_v20 = vmul.f32 %v2906_v52, %v4399_v12 }
 0x4be   : > { %vm2921_vm7 = vcmp.gt.f32.partialorder %v2905_v30, 0.0  ;;  %v2937_v44 = vmul.f32 %v2905_v30, %v4399_v12 }
 0x4bf   : > { %v2954_v56 = vsel %vm2922_vm5, %v2906_v52, %v2938_v20 }
 0x4c0   : > { %2970 = vst.msk [vmem:[%s3622_s25 + $0x38] sm:$0xff] %vm1293_vm3, %v2954_v56  ;;  %v2953_v5 = vsel %vm2921_vm7, %v2905_v30, %v2937_v44 }
 0x4c1   : > { %2969 = vst.msk [vmem:[%s3622_s25 + $0x30] sm:$0xff] %vm1293_vm3, %v2953_v5 }
 0x4d8   : > { %v3385_v34 = vpop.f32.mrb[8].mxu1 }
 0x4d9   : > { %v2885_v60 = vmul.f32 %v3385_v34, %v4993_v57  ;;  %v2830_v39 = vpop.f32.mrb[9].mxu1 }
 0x4da   : > { %v2884_v14 = vmul.f32 %v4993_v57, %v2830_v39 }
 0x4db   : > { %v2908_v51 = vadd.f32 %v4998_v15, %v2885_v60 }
 0x4dc   : > { %v2907_v40 = vadd.f32 %v4998_v15, %v2884_v14 }
 0x4dd   : > { %vm2924_vm9 = vcmp.gt.f32.partialorder %v2908_v51, 0.0  ;;  %v2940_v59 = vmul.f32 %v2908_v51, %v4399_v12 }
 0x4de   : > { %vm2923_vm11 = vcmp.gt.f32.partialorder %v2907_v40, 0.0  ;;  %v2939_v63 = vmul.f32 %v2907_v40, %v4399_v12 }
 0x4df   : > { %v2956_v32 = vsel %vm2924_vm9, %v2908_v51, %v2940_v59 }
 0x4e0   : > { %2972 = vst.msk [vmem:[%s3622_s25 + $0x48] sm:$0xff] %vm1293_vm3, %v2956_v32  ;;  %v2955_v1 = vsel %vm2923_vm11, %v2907_v40, %v2939_v63 }
 0x4e1   : > { %2971 = vst.msk [vmem:[%s3622_s25 + $0x40] sm:$0xff] %vm1293_vm3, %v2955_v1 }
 0x4f8   : > { %v3388_v58 = vpop.f32.mrb[10].mxu1 }
 0x4f9   : > { %v2887_v42 = vmul.f32 %v3388_v58, %v4993_v57  ;;  %v2840_v13 = vpop.f32.mrb[11].mxu1 }
 0x4fa   : > { %v2886_v27 = vmul.f32 %v4993_v57, %v2840_v13 }
 0x4fb   : > { %v2910_v10 = vadd.f32 %v4998_v15, %v2887_v42 }
 0x4fc   : > { %v2909_v54 = vadd.f32 %v4998_v15, %v2886_v27 }
 0x4fd   : > { %vm2926_vm12 = vcmp.gt.f32.partialorder %v2910_v10, 0.0  ;;  %v2942_v49 = vmul.f32 %v2910_v10, %v4399_v12 }
 0x4fe   : > { %vm2925_vm13 = vcmp.gt.f32.partialorder %v2909_v54, 0.0  ;;  %v2941_v43 = vmul.f32 %v2909_v54, %v4399_v12 }
 0x4ff   : > { %v2958_v37 = vsel %vm2926_vm12, %v2910_v10, %v2942_v49 }
 0x500   : > { %2974 = vst.msk [vmem:[%s3622_s25 + $0x58] sm:$0xff] %vm1293_vm3, %v2958_v37  ;;  %v2957_v47 = vsel %vm2925_vm13, %v2909_v54, %v2941_v43 }
 0x501   : > { %2973 = vst.msk [vmem:[%s3622_s25 + $0x50] sm:$0xff] %vm1293_vm3, %v2957_v47 }
 0x519   : > { %v3391_v29 = vpop.f32.mrb[12].mxu1 }
 0x51a   : > { %v2889_v53 = vmul.f32 %v3391_v29, %v4993_v57  ;;  %v2850_v48 = vpop.f32.mrb[13].mxu1 }
 0x51b   : > { %v2888_v19 = vmul.f32 %v4993_v57, %v2850_v48 }
 0x51c   : > { %v2912_v55 = vadd.f32 %v4998_v15, %v2889_v53 }
 0x51d   : > { %v2911_v61 = vadd.f32 %v4998_v15, %v2888_v19 }
 0x51e   : > { %vm2928_vm14 = vcmp.gt.f32.partialorder %v2912_v55, 0.0  ;;  %v2944_v0 = vmul.f32 %v2912_v55, %v4399_v12 }
 0x51f   : > { %vm2927_vm15 = vcmp.gt.f32.partialorder %v2911_v61, 0.0  ;;  %v2943_v7 = vmul.f32 %v2911_v61, %v4399_v12 }
 0x520   : > { %v2960_v18 = vsel %vm2928_vm14, %v2912_v55, %v2944_v0 }
 0x521   : > { %2976 = vst.msk [vmem:[%s3622_s25 + $0x68] sm:$0xff] %vm1293_vm3, %v2960_v18  ;;  %v2959_v8 = vsel %vm2927_vm15, %v2911_v61, %v2943_v7 }
 0x522   : > { %2975 = vst.msk [vmem:[%s3622_s25 + $0x60] sm:$0xff] %vm1293_vm3, %v2959_v8 }
 0x526   : > { %v3394_v46 = vpop.f32.mrb[14].mxu1 }
 0x527   : > { %v2891_v31 = vmul.f32 %v3394_v46, %v4993_v57  ;;  %v2860_v3 = vpop.f32.mrb[15].mxu1 }
 0x528   : > { %v2890_v6 = vmul.f32 %v4993_v57, %v2860_v3 }
 0x529   : > { %v2914_v21 = vadd.f32 %v4998_v15, %v2891_v31 }
 0x52a   : > { %v2913_v11 = vadd.f32 %v4998_v15, %v2890_v6 }
 0x52b   : > { %vm2930_vm0 = vcmp.gt.f32.partialorder %v2914_v21, 0.0  ;;  %v2946_v2 = vmul.f32 %v2914_v21, %v4399_v12 }
 0x52c   : > { %vm2929_vm4 = vcmp.gt.f32.partialorder %v2913_v11, 0.0  ;;  %v2945_v4 = vmul.f32 %v2913_v11, %v4399_v12 }
 0x52d   : > { %v2962_v50 = vsel %vm2930_vm0, %v2914_v21, %v2946_v2 }
 0x52e   : > { %2978 = vst.msk [vmem:[%s3622_s25 + $0x78] sm:$0xff] %vm1293_vm3, %v2962_v50  ;;  %v2961_v16 = vsel %vm2929_vm4, %v2913_v11, %v2945_v4 }
 0x52f   : > { %2977 = vst.msk [vmem:[%s3622_s25 + $0x70] sm:$0xff] %vm1293_vm3, %v2961_v16 }
 0x530 PF: > { %s19_s11 = sadd.s32 1, %s3513_s11   ;;  %s5104_s29 = smov %s3505_s9 }
 0x531   : > { %p16_p9 = scmp.ge.s32.totalorder %s19_s11, 6   ;;  %s5105_s30 = smov %s3509_s10 }
 0x532   : > { %s5106_s9 = smov %s5109_s7  ;;  %s5107_s10 = smov %s5113_s12 }
 0x533   :  { %18 = sbr.rel (!%p16_p9) target bundleno = 3 (0x3), region = 101 }

</bundles_post_ra>
